<compile_context>
chip_gen: v7x
topology: tpu7x:2x2x1
jax: 0.10.0
libtpu: 0.0.40
codegen_flags: <defaults>
</compile_context>

<pallas_src>
import functools

import jax
import jax.numpy as jnp
from jax.experimental import pallas as pl
from jax.experimental.pallas import tpu as pltpu


def basenet_kernel(xpad_ref, wconv_ref, bconv_ref, wfc_ref, bfc_ref,
                   fmap_ref, feat_ref, logits_ref, *, h, w):
    """Processes one batch image per grid step.

    xpad_ref  : (1, H+2, W+2, Cin)  zero-padded NHWC image (f32)
    wconv_ref : (9, Cin, F)         conv weight, one (Cin, F) slab per 3x3 tap
    bconv_ref : (1, F)              conv bias
    wfc_ref   : (F, C)              fc weight
    bfc_ref   : (1, C)              fc bias
    fmap_ref  : (1, H*W, F)         conv+ReLU activations for this image
    feat_ref  : (1, 1, F)           pooled features for this image
    logits_ref: (1, 1, C)           fc output for this image
    """
    cin = xpad_ref.shape[-1]
    f = wconv_ref.shape[-1]
    hw = h * w

    # 3x3 conv as 9 shifted MXU matmuls (accumulate; nothing materialized in HBM).
    acc = jnp.zeros((hw, f), jnp.float32)
    for dh in range(3):
        for dw in range(3):
            slab = xpad_ref[0, dh:dh + h, dw:dw + w, :]        # (H, W, Cin), static slice
            slab2d = slab.reshape(hw, cin)                     # collapse leading dims, minor dim kept
            wk = wconv_ref[dh * 3 + dw]                        # (Cin, F)
            acc = acc + jnp.dot(slab2d.astype(jnp.bfloat16),   # bf16 MXU path (v6e/v7x)
                                wk.astype(jnp.bfloat16),
                                preferred_element_type=jnp.float32)

    # Bias + ReLU in f32; store fmap in f32 (module returns float32 tensors).
    z = jnp.maximum(acc + bconv_ref[...], 0.0)                 # (H*W, F)
    fmap_ref[0] = z

    # Global average pool -> features (single reduction; no per-image Python loop).
    feat = jnp.sum(z, axis=0, keepdims=True) * jnp.float32(1.0 / hw)   # (1, F)
    feat_ref[0] = feat

    # fc: logits = features @ W_fc + b_fc (fused in the same step).
    logits_ref[0] = (jnp.dot(feat, wfc_ref[...],
                             preferred_element_type=jnp.float32)
                     + bfc_ref[...])


def basenet_forward(x_nchw, params):
    """Returns {'fmaps': [fmap_nchw], 'features': (N,F), 'logits': (N,C)}."""
    N, Cin, H, W = x_nchw.shape
    F = params["w_conv"].shape[-1]
    C = params["w_fc"].shape[-1]
    HW = H * W

    # Layout glue on the *input only* (smallest tensor): NCHW -> NHWC + spatial
    # zero pad.  No 9x im2col buffer is built any more.
    x = jnp.transpose(x_nchw, (0, 2, 3, 1)).astype(jnp.float32)
    xpad = jnp.pad(x, ((0, 0), (1, 1), (1, 1), (0, 0)))         # (N, H+2, W+2, Cin)
    wconv = params["w_conv"].reshape(9, Cin, F)                 # (3,3,Cin,F) -> (9,Cin,F)

    kernel = functools.partial(basenet_kernel, h=H, w=W)

    flops = N * (2 * HW * 9 * Cin * F + HW * F + 2 * F * C)
    bytes_accessed = 4 * (xpad.size + wconv.size + F + F * C + C
                          + N * HW * F + N * F + N * C)

    fmap_flat, feat3, logits3 = pl.pallas_call(
        kernel,
        grid=(N,),
        in_specs=[
            # One padded image per grid step (double-buffered by the pipeline).
            pl.BlockSpec((1, H + 2, W + 2, Cin), lambda i: (i, 0, 0, 0)),
            # Weights/biases: constant block index -> VMEM-resident across the
            # whole grid, no per-step re-DMA.
            pl.BlockSpec((9, Cin, F), lambda i: (0, 0, 0)),
            pl.BlockSpec((1, F), lambda i: (0, 0)),
            pl.BlockSpec((F, C), lambda i: (0, 0)),
            pl.BlockSpec((1, C), lambda i: (0, 0)),
        ],
        out_specs=(
            pl.BlockSpec((1, HW, F), lambda i: (i, 0, 0)),
            pl.BlockSpec((1, 1, F), lambda i: (i, 0, 0)),
            pl.BlockSpec((1, 1, C), lambda i: (i, 0, 0)),
        ),
        out_shape=(
            jax.ShapeDtypeStruct((N, HW, F), jnp.float32),
            jax.ShapeDtypeStruct((N, 1, F), jnp.float32),
            jax.ShapeDtypeStruct((N, 1, C), jnp.float32),
        ),
        compiler_params=pltpu.CompilerParams(
            # Images are fully independent -> batch axis is parallel (lets v7x
            # shard the grid across its 2 TensorCores).
            dimension_semantics=("parallel",),
            vmem_limit_bytes=32 * 1024 * 1024,
        ),
        cost_estimate=pl.CostEstimate(flops=flops, transcendentals=0,
                                      bytes_accessed=bytes_accessed),
    )(xpad, wconv, params["b_conv"], params["w_fc"], params["b_fc"])

    # TODO(synk): for large stems (e.g. 224x224, Cin>=64) add a second, row-tiled
    # grid axis with per-image partial-sum pooling so each block fits the 32 MiB
    # scoped VMEM budget (v7x only has 64 MiB physical VMEM); at real feature
    # dims (512/768) the fmap stores are already lane-dense.
    fmap = jnp.transpose(fmap_flat.reshape(N, H, W, F), (0, 3, 1, 2))  # back to NCHW
    return {"fmaps": [fmap],
            "features": feat3.reshape(N, F),
            "logits": logits3.reshape(N, C)}


def init_params(key, cin=4, feature_dim=32, num_classes=10):
    k1, k2, k3, k4 = jax.random.split(key, 4)
    return {
        # conv stem weight stored as (kh, kw, Cin, F); flattened to (9, Cin, F)
        # tap-major for the in-kernel shifted-matmul accumulation.
        "w_conv": 0.1 * jax.random.normal(k1, (3, 3, cin, feature_dim), jnp.float32),
        "b_conv": 0.1 * jax.random.normal(k2, (1, feature_dim), jnp.float32),
        # fc (generate_fc(in_dim=feature_dim, out_dim=num_classes))
        "w_fc": 0.1 * jax.random.normal(k3, (feature_dim, num_classes), jnp.float32),
        "b_fc": 0.1 * jax.random.normal(k4, (1, num_classes), jnp.float32),
    }


if __name__ == "__main__":
    key = jax.random.PRNGKey(0)
    kp, kx = jax.random.split(key)
    params = init_params(kp, cin=4, feature_dim=32, num_classes=10)
    x = jax.random.normal(kx, (2, 4, 16, 16), jnp.float32)   # NCHW, like PyTorch

    out = basenet_forward(x, params)
    jax.block_until_ready(out)

    assert out["features"].shape == (2, 32)
    assert out["logits"].shape == (2, 10)
    assert out["fmaps"][0].shape == (2, 32, 16, 16)
    print("KERNEL_OK")
</pallas_src>

<mosaic_0001>
module attributes {stable_mosaic.version = 11 : i64} {
  func.func @basenet_kernel(%arg0: i32, %arg1: memref<1x18x18x4xf32, #tpu.memory_space<vmem>>, %arg2: memref<9x4x32xf32, #tpu.memory_space<vmem>>, %arg3: memref<1x32xf32, #tpu.memory_space<vmem>>, %arg4: memref<32x10xf32, #tpu.memory_space<vmem>>, %arg5: memref<1x10xf32, #tpu.memory_space<vmem>>, %arg6: memref<1x256x32xf32, #tpu.memory_space<vmem>>, %arg7: memref<1x1x32xf32, #tpu.memory_space<vmem>>, %arg8: memref<1x1x10xf32, #tpu.memory_space<vmem>>) attributes {dimension_semantics = [#tpu.dimension_semantics<parallel>], iteration_bounds = array<i64: 2>, scalar_prefetch = 0 : i64, scratch_operands = 0 : i64, tpu.core_type = #tpu.core_type<tc>, window_params = [{transform_indices = @transform_0, window_bounds = array<i64: 1, 18, 18, 4>}, {pipeline_mode = #tpu.pipeline_mode<synchronous>, transform_indices = @transform_1, window_bounds = array<i64: 9, 4, 32>}, {pipeline_mode = #tpu.pipeline_mode<synchronous>, transform_indices = @transform_2, window_bounds = array<i64: 1, 32>}, {pipeline_mode = #tpu.pipeline_mode<synchronous>, transform_indices = @transform_3, window_bounds = array<i64: 32, 10>}, {pipeline_mode = #tpu.pipeline_mode<synchronous>, transform_indices = @transform_4, window_bounds = array<i64: 1, 10>}, {transform_indices = @transform_5, window_bounds = array<i64: 1, 256, 32>}, {transform_indices = @transform_6, window_bounds = array<i64: 1, 1, 32>}, {transform_indices = @transform_7, window_bounds = array<i64: 1, 1, 10>}]} {
    %cst = arith.constant 0.000000e+00 : f32
    %0 = vector.broadcast %cst : f32 to vector<256x32xf32>
    %c0 = arith.constant 0 : index
    %c0_0 = arith.constant 0 : index
    %c0_1 = arith.constant 0 : index
    %c0_2 = arith.constant 0 : index
    %1 = vector.load %arg1[%c0, %c0_0, %c0_1, %c0_2] : memref<1x18x18x4xf32, #tpu.memory_space<vmem>>, vector<1x16x16x4xf32>
    %2 = vector.shape_cast %1 : vector<1x16x16x4xf32> to vector<16x16x4xf32>
    %3 = vector.shape_cast %2 : vector<16x16x4xf32> to vector<256x4xf32>
    %c0_3 = arith.constant 0 : index
    %c0_4 = arith.constant 0 : index
    %c0_5 = arith.constant 0 : index
    %4 = vector.load %arg2[%c0_3, %c0_4, %c0_5] : memref<9x4x32xf32, #tpu.memory_space<vmem>>, vector<1x4x32xf32>
    %5 = vector.shape_cast %4 : vector<1x4x32xf32> to vector<4x32xf32>
    %6 = arith.truncf %3 : vector<256x4xf32> to vector<256x4xbf16>
    %7 = arith.truncf %5 : vector<4x32xf32> to vector<4x32xbf16>
    %cst_6 = arith.constant dense<0.000000e+00> : vector<256x32xf32>
    %8 = tpu.matmul %6, %7, %cst_6 {dimension_numbers = #tpu.dot_dimension_numbers<[1], [0], [0], [1], [0, 0, 1, 1], [], []>} : vector<256x4xbf16>, vector<4x32xbf16>, vector<256x32xf32> -> vector<256x32xf32>
    %9 = arith.addf %0, %8 : vector<256x32xf32>
    %c0_7 = arith.constant 0 : index
    %c0_8 = arith.constant 0 : index
    %c1 = arith.constant 1 : index
    %c0_9 = arith.constant 0 : index
    %10 = vector.load %arg1[%c0_7, %c0_8, %c1, %c0_9] : memref<1x18x18x4xf32, #tpu.memory_space<vmem>>, vector<1x16x16x4xf32>
    %11 = vector.shape_cast %10 : vector<1x16x16x4xf32> to vector<16x16x4xf32>
    %12 = vector.shape_cast %11 : vector<16x16x4xf32> to vector<256x4xf32>
    %c1_10 = arith.constant 1 : index
    %c0_11 = arith.constant 0 : index
    %c0_12 = arith.constant 0 : index
    %13 = vector.load %arg2[%c1_10, %c0_11, %c0_12] : memref<9x4x32xf32, #tpu.memory_space<vmem>>, vector<1x4x32xf32>
    %14 = vector.shape_cast %13 : vector<1x4x32xf32> to vector<4x32xf32>
    %15 = arith.truncf %12 : vector<256x4xf32> to vector<256x4xbf16>
    %16 = arith.truncf %14 : vector<4x32xf32> to vector<4x32xbf16>
    %cst_13 = arith.constant dense<0.000000e+00> : vector<256x32xf32>
    %17 = tpu.matmul %15, %16, %cst_13 {dimension_numbers = #tpu.dot_dimension_numbers<[1], [0], [0], [1], [0, 0, 1, 1], [], []>} : vector<256x4xbf16>, vector<4x32xbf16>, vector<256x32xf32> -> vector<256x32xf32>
    %18 = arith.addf %9, %17 : vector<256x32xf32>
    %c0_14 = arith.constant 0 : index
    %c0_15 = arith.constant 0 : index
    %c2 = arith.constant 2 : index
    %c0_16 = arith.constant 0 : index
    %19 = vector.load %arg1[%c0_14, %c0_15, %c2, %c0_16] : memref<1x18x18x4xf32, #tpu.memory_space<vmem>>, vector<1x16x16x4xf32>
    %20 = vector.shape_cast %19 : vector<1x16x16x4xf32> to vector<16x16x4xf32>
    %21 = vector.shape_cast %20 : vector<16x16x4xf32> to vector<256x4xf32>
    %c2_17 = arith.constant 2 : index
    %c0_18 = arith.constant 0 : index
    %c0_19 = arith.constant 0 : index
    %22 = vector.load %arg2[%c2_17, %c0_18, %c0_19] : memref<9x4x32xf32, #tpu.memory_space<vmem>>, vector<1x4x32xf32>
    %23 = vector.shape_cast %22 : vector<1x4x32xf32> to vector<4x32xf32>
    %24 = arith.truncf %21 : vector<256x4xf32> to vector<256x4xbf16>
    %25 = arith.truncf %23 : vector<4x32xf32> to vector<4x32xbf16>
    %cst_20 = arith.constant dense<0.000000e+00> : vector<256x32xf32>
    %26 = tpu.matmul %24, %25, %cst_20 {dimension_numbers = #tpu.dot_dimension_numbers<[1], [0], [0], [1], [0, 0, 1, 1], [], []>} : vector<256x4xbf16>, vector<4x32xbf16>, vector<256x32xf32> -> vector<256x32xf32>
    %27 = arith.addf %18, %26 : vector<256x32xf32>
    %c0_21 = arith.constant 0 : index
    %c1_22 = arith.constant 1 : index
    %c0_23 = arith.constant 0 : index
    %c0_24 = arith.constant 0 : index
    %28 = vector.load %arg1[%c0_21, %c1_22, %c0_23, %c0_24] : memref<1x18x18x4xf32, #tpu.memory_space<vmem>>, vector<1x16x16x4xf32>
    %29 = vector.shape_cast %28 : vector<1x16x16x4xf32> to vector<16x16x4xf32>
    %30 = vector.shape_cast %29 : vector<16x16x4xf32> to vector<256x4xf32>
    %c3 = arith.constant 3 : index
    %c0_25 = arith.constant 0 : index
    %c0_26 = arith.constant 0 : index
    %31 = vector.load %arg2[%c3, %c0_25, %c0_26] : memref<9x4x32xf32, #tpu.memory_space<vmem>>, vector<1x4x32xf32>
    %32 = vector.shape_cast %31 : vector<1x4x32xf32> to vector<4x32xf32>
    %33 = arith.truncf %30 : vector<256x4xf32> to vector<256x4xbf16>
    %34 = arith.truncf %32 : vector<4x32xf32> to vector<4x32xbf16>
    %cst_27 = arith.constant dense<0.000000e+00> : vector<256x32xf32>
    %35 = tpu.matmul %33, %34, %cst_27 {dimension_numbers = #tpu.dot_dimension_numbers<[1], [0], [0], [1], [0, 0, 1, 1], [], []>} : vector<256x4xbf16>, vector<4x32xbf16>, vector<256x32xf32> -> vector<256x32xf32>
    %36 = arith.addf %27, %35 : vector<256x32xf32>
    %c0_28 = arith.constant 0 : index
    %c1_29 = arith.constant 1 : index
    %c1_30 = arith.constant 1 : index
    %c0_31 = arith.constant 0 : index
    %37 = vector.load %arg1[%c0_28, %c1_29, %c1_30, %c0_31] : memref<1x18x18x4xf32, #tpu.memory_space<vmem>>, vector<1x16x16x4xf32>
    %38 = vector.shape_cast %37 : vector<1x16x16x4xf32> to vector<16x16x4xf32>
    %39 = vector.shape_cast %38 : vector<16x16x4xf32> to vector<256x4xf32>
    %c4 = arith.constant 4 : index
    %c0_32 = arith.constant 0 : index
    %c0_33 = arith.constant 0 : index
    %40 = vector.load %arg2[%c4, %c0_32, %c0_33] : memref<9x4x32xf32, #tpu.memory_space<vmem>>, vector<1x4x32xf32>
    %41 = vector.shape_cast %40 : vector<1x4x32xf32> to vector<4x32xf32>
    %42 = arith.truncf %39 : vector<256x4xf32> to vector<256x4xbf16>
    %43 = arith.truncf %41 : vector<4x32xf32> to vector<4x32xbf16>
    %cst_34 = arith.constant dense<0.000000e+00> : vector<256x32xf32>
    %44 = tpu.matmul %42, %43, %cst_34 {dimension_numbers = #tpu.dot_dimension_numbers<[1], [0], [0], [1], [0, 0, 1, 1], [], []>} : vector<256x4xbf16>, vector<4x32xbf16>, vector<256x32xf32> -> vector<256x32xf32>
    %45 = arith.addf %36, %44 : vector<256x32xf32>
    %c0_35 = arith.constant 0 : index
    %c1_36 = arith.constant 1 : index
    %c2_37 = arith.constant 2 : index
    %c0_38 = arith.constant 0 : index
    %46 = vector.load %arg1[%c0_35, %c1_36, %c2_37, %c0_38] : memref<1x18x18x4xf32, #tpu.memory_space<vmem>>, vector<1x16x16x4xf32>
    %47 = vector.shape_cast %46 : vector<1x16x16x4xf32> to vector<16x16x4xf32>
    %48 = vector.shape_cast %47 : vector<16x16x4xf32> to vector<256x4xf32>
    %c5 = arith.constant 5 : index
    %c0_39 = arith.constant 0 : index
    %c0_40 = arith.constant 0 : index
    %49 = vector.load %arg2[%c5, %c0_39, %c0_40] : memref<9x4x32xf32, #tpu.memory_space<vmem>>, vector<1x4x32xf32>
    %50 = vector.shape_cast %49 : vector<1x4x32xf32> to vector<4x32xf32>
    %51 = arith.truncf %48 : vector<256x4xf32> to vector<256x4xbf16>
    %52 = arith.truncf %50 : vector<4x32xf32> to vector<4x32xbf16>
    %cst_41 = arith.constant dense<0.000000e+00> : vector<256x32xf32>
    %53 = tpu.matmul %51, %52, %cst_41 {dimension_numbers = #tpu.dot_dimension_numbers<[1], [0], [0], [1], [0, 0, 1, 1], [], []>} : vector<256x4xbf16>, vector<4x32xbf16>, vector<256x32xf32> -> vector<256x32xf32>
    %54 = arith.addf %45, %53 : vector<256x32xf32>
    %c0_42 = arith.constant 0 : index
    %c2_43 = arith.constant 2 : index
    %c0_44 = arith.constant 0 : index
    %c0_45 = arith.constant 0 : index
    %55 = vector.load %arg1[%c0_42, %c2_43, %c0_44, %c0_45] : memref<1x18x18x4xf32, #tpu.memory_space<vmem>>, vector<1x16x16x4xf32>
    %56 = vector.shape_cast %55 : vector<1x16x16x4xf32> to vector<16x16x4xf32>
    %57 = vector.shape_cast %56 : vector<16x16x4xf32> to vector<256x4xf32>
    %c6 = arith.constant 6 : index
    %c0_46 = arith.constant 0 : index
    %c0_47 = arith.constant 0 : index
    %58 = vector.load %arg2[%c6, %c0_46, %c0_47] : memref<9x4x32xf32, #tpu.memory_space<vmem>>, vector<1x4x32xf32>
    %59 = vector.shape_cast %58 : vector<1x4x32xf32> to vector<4x32xf32>
    %60 = arith.truncf %57 : vector<256x4xf32> to vector<256x4xbf16>
    %61 = arith.truncf %59 : vector<4x32xf32> to vector<4x32xbf16>
    %cst_48 = arith.constant dense<0.000000e+00> : vector<256x32xf32>
    %62 = tpu.matmul %60, %61, %cst_48 {dimension_numbers = #tpu.dot_dimension_numbers<[1], [0], [0], [1], [0, 0, 1, 1], [], []>} : vector<256x4xbf16>, vector<4x32xbf16>, vector<256x32xf32> -> vector<256x32xf32>
    %63 = arith.addf %54, %62 : vector<256x32xf32>
    %c0_49 = arith.constant 0 : index
    %c2_50 = arith.constant 2 : index
    %c1_51 = arith.constant 1 : index
    %c0_52 = arith.constant 0 : index
    %64 = vector.load %arg1[%c0_49, %c2_50, %c1_51, %c0_52] : memref<1x18x18x4xf32, #tpu.memory_space<vmem>>, vector<1x16x16x4xf32>
    %65 = vector.shape_cast %64 : vector<1x16x16x4xf32> to vector<16x16x4xf32>
    %66 = vector.shape_cast %65 : vector<16x16x4xf32> to vector<256x4xf32>
    %c7 = arith.constant 7 : index
    %c0_53 = arith.constant 0 : index
    %c0_54 = arith.constant 0 : index
    %67 = vector.load %arg2[%c7, %c0_53, %c0_54] : memref<9x4x32xf32, #tpu.memory_space<vmem>>, vector<1x4x32xf32>
    %68 = vector.shape_cast %67 : vector<1x4x32xf32> to vector<4x32xf32>
    %69 = arith.truncf %66 : vector<256x4xf32> to vector<256x4xbf16>
    %70 = arith.truncf %68 : vector<4x32xf32> to vector<4x32xbf16>
    %cst_55 = arith.constant dense<0.000000e+00> : vector<256x32xf32>
    %71 = tpu.matmul %69, %70, %cst_55 {dimension_numbers = #tpu.dot_dimension_numbers<[1], [0], [0], [1], [0, 0, 1, 1], [], []>} : vector<256x4xbf16>, vector<4x32xbf16>, vector<256x32xf32> -> vector<256x32xf32>
    %72 = arith.addf %63, %71 : vector<256x32xf32>
    %c0_56 = arith.constant 0 : index
    %c2_57 = arith.constant 2 : index
    %c2_58 = arith.constant 2 : index
    %c0_59 = arith.constant 0 : index
    %73 = vector.load %arg1[%c0_56, %c2_57, %c2_58, %c0_59] : memref<1x18x18x4xf32, #tpu.memory_space<vmem>>, vector<1x16x16x4xf32>
    %74 = vector.shape_cast %73 : vector<1x16x16x4xf32> to vector<16x16x4xf32>
    %75 = vector.shape_cast %74 : vector<16x16x4xf32> to vector<256x4xf32>
    %c8 = arith.constant 8 : index
    %c0_60 = arith.constant 0 : index
    %c0_61 = arith.constant 0 : index
    %76 = vector.load %arg2[%c8, %c0_60, %c0_61] : memref<9x4x32xf32, #tpu.memory_space<vmem>>, vector<1x4x32xf32>
    %77 = vector.shape_cast %76 : vector<1x4x32xf32> to vector<4x32xf32>
    %78 = arith.truncf %75 : vector<256x4xf32> to vector<256x4xbf16>
    %79 = arith.truncf %77 : vector<4x32xf32> to vector<4x32xbf16>
    %cst_62 = arith.constant dense<0.000000e+00> : vector<256x32xf32>
    %80 = tpu.matmul %78, %79, %cst_62 {dimension_numbers = #tpu.dot_dimension_numbers<[1], [0], [0], [1], [0, 0, 1, 1], [], []>} : vector<256x4xbf16>, vector<4x32xbf16>, vector<256x32xf32> -> vector<256x32xf32>
    %81 = arith.addf %72, %80 : vector<256x32xf32>
    %c0_63 = arith.constant 0 : index
    %c0_64 = arith.constant 0 : index
    %82 = vector.load %arg3[%c0_63, %c0_64] : memref<1x32xf32, #tpu.memory_space<vmem>>, vector<1x32xf32>
    %83 = vector.broadcast %82 : vector<1x32xf32> to vector<256x32xf32>
    %84 = arith.addf %81, %83 : vector<256x32xf32>
    %cst_65 = arith.constant 0.000000e+00 : f32
    %85 = vector.broadcast %cst_65 : f32 to vector<256x32xf32>
    %86 = arith.maximumf %84, %85 : vector<256x32xf32>
    %c0_66 = arith.constant 0 : index
    %c0_67 = arith.constant 0 : index
    %c0_68 = arith.constant 0 : index
    %87 = vector.load %arg6[%c0_66, %c0_67, %c0_68] : memref<1x256x32xf32, #tpu.memory_space<vmem>>, vector<1x256x32xf32>
    %88 = vector.shape_cast %87 : vector<1x256x32xf32> to vector<256x32xf32>
    %89 = vector.shape_cast %86 : vector<256x32xf32> to vector<1x256x32xf32>
    tpu.vector_store %arg6[%c0_66, %c0_67, %c0_68], %89 {strides = array<i32>} : memref<1x256x32xf32, #tpu.memory_space<vmem>>, vector<1x256x32xf32>,
    %cst_69 = arith.constant dense<0.000000e+00> : vector<32xf32>
    %90 = vector.multi_reduction <add>, %86, %cst_69 [0] : vector<256x32xf32> to vector<32xf32>
    %91 = vector.shape_cast %90 : vector<32xf32> to vector<1x32xf32>
    %cst_70 = arith.constant 3.906250e-03 : f32
    %92 = vector.broadcast %cst_70 : f32 to vector<1x32xf32>
    %93 = arith.mulf %91, %92 : vector<1x32xf32>
    %c0_71 = arith.constant 0 : index
    %c0_72 = arith.constant 0 : index
    %c0_73 = arith.constant 0 : index
    %94 = vector.load %arg7[%c0_71, %c0_72, %c0_73] : memref<1x1x32xf32, #tpu.memory_space<vmem>>, vector<1x1x32xf32>
    %95 = vector.shape_cast %94 : vector<1x1x32xf32> to vector<1x32xf32>
    %96 = vector.shape_cast %93 : vector<1x32xf32> to vector<1x1x32xf32>
    tpu.vector_store %arg7[%c0_71, %c0_72, %c0_73], %96 {strides = array<i32>} : memref<1x1x32xf32, #tpu.memory_space<vmem>>, vector<1x1x32xf32>,
    %c0_74 = arith.constant 0 : index
    %c0_75 = arith.constant 0 : index
    %97 = vector.load %arg4[%c0_74, %c0_75] : memref<32x10xf32, #tpu.memory_space<vmem>>, vector<32x10xf32>
    %cst_76 = arith.constant dense<0.000000e+00> : vector<1x10xf32>
    %98 = tpu.matmul %93, %97, %cst_76 {dimension_numbers = #tpu.dot_dimension_numbers<[1], [0], [0], [1], [0, 0, 1, 1], [], []>} : vector<1x32xf32>, vector<32x10xf32>, vector<1x10xf32> -> vector<1x10xf32>
    %c0_77 = arith.constant 0 : index
    %c0_78 = arith.constant 0 : index
    %99 = vector.load %arg5[%c0_77, %c0_78] : memref<1x10xf32, #tpu.memory_space<vmem>>, vector<1x10xf32>
    %100 = arith.addf %98, %99 : vector<1x10xf32>
    %c0_79 = arith.constant 0 : index
    %c0_80 = arith.constant 0 : index
    %c0_81 = arith.constant 0 : index
    %101 = vector.load %arg8[%c0_79, %c0_80, %c0_81] : memref<1x1x10xf32, #tpu.memory_space<vmem>>, vector<1x1x10xf32>
    %102 = vector.shape_cast %101 : vector<1x1x10xf32> to vector<1x10xf32>
    %103 = vector.shape_cast %100 : vector<1x10xf32> to vector<1x1x10xf32>
    tpu.vector_store %arg8[%c0_79, %c0_80, %c0_81], %103 {strides = array<i32>} : memref<1x1x10xf32, #tpu.memory_space<vmem>>, vector<1x1x10xf32>,
    return
  }
  func.func @transform_0(%arg0: i32) -> (i32, i32, i32, i32) {
    %c0_i32 = arith.constant 0 : i32
    %c0_i32_0 = arith.constant 0 : i32
    %c0_i32_1 = arith.constant 0 : i32
    %c0_i32_2 = arith.constant 0 : i32
    return %arg0, %c0_i32, %c0_i32_0, %c0_i32_1 : i32, i32, i32, i32
  }
  func.func @transform_1(%arg0: i32) -> (i32, i32, i32) {
    %c0_i32 = arith.constant 0 : i32
    %c0_i32_0 = arith.constant 0 : i32
    %c0_i32_1 = arith.constant 0 : i32
    %c0_i32_2 = arith.constant 0 : i32
    return %c0_i32, %c0_i32_0, %c0_i32_1 : i32, i32, i32
  }
  func.func @transform_2(%arg0: i32) -> (i32, i32) {
    %c0_i32 = arith.constant 0 : i32
    %c0_i32_0 = arith.constant 0 : i32
    %c0_i32_1 = arith.constant 0 : i32
    return %c0_i32, %c0_i32_0 : i32, i32
  }
  func.func @transform_3(%arg0: i32) -> (i32, i32) {
    %c0_i32 = arith.constant 0 : i32
    %c0_i32_0 = arith.constant 0 : i32
    %c0_i32_1 = arith.constant 0 : i32
    return %c0_i32, %c0_i32_0 : i32, i32
  }
  func.func @transform_4(%arg0: i32) -> (i32, i32) {
    %c0_i32 = arith.constant 0 : i32
    %c0_i32_0 = arith.constant 0 : i32
    %c0_i32_1 = arith.constant 0 : i32
    return %c0_i32, %c0_i32_0 : i32, i32
  }
  func.func @transform_5(%arg0: i32) -> (i32, i32, i32) {
    %c0_i32 = arith.constant 0 : i32
    %c0_i32_0 = arith.constant 0 : i32
    %c0_i32_1 = arith.constant 0 : i32
    return %arg0, %c0_i32, %c0_i32_0 : i32, i32, i32
  }
  func.func @transform_6(%arg0: i32) -> (i32, i32, i32) {
    %c0_i32 = arith.constant 0 : i32
    %c0_i32_0 = arith.constant 0 : i32
    %c0_i32_1 = arith.constant 0 : i32
    return %arg0, %c0_i32, %c0_i32_0 : i32, i32, i32
  }
  func.func @transform_7(%arg0: i32) -> (i32, i32, i32) {
    %c0_i32 = arith.constant 0 : i32
    %c0_i32_0 = arith.constant 0 : i32
    %c0_i32_1 = arith.constant 0 : i32
    return %arg0, %c0_i32, %c0_i32_0 : i32, i32, i32
  }
}

</mosaic_0001>

<bundles_post_ra>
// kernel: tpu_custom_call.1
= control target key start
LH: loop header
LB: loop body
LE: loop exit
PB: predicated region body
PF: predicated region fallthrough
CT: control target
= control target key end

     0   :  { %13 = vsyncpa [#allocation3], 0  ;;  %s5500_s0 = inlined_call_operand.vmem [shape: f32[2,18,18,4], index: 0, kind: input, shape index: {}]   ;;  %s5501_s1 = inlined_call_operand.vmem [shape: f32[9,4,32], index: 1, kind: input, shape index: {}]   ;;  %s5502_s2 = inlined_call_operand.vmem [shape: f32[1,32], index: 2, kind: input, shape index: {}]   ;;  %s5503_s3 = inlined_call_operand.vmem [shape: f32[32,10], index: 3, kind: input, shape index: {}]   ;;  %s5504_s4 = inlined_call_operand.vmem [shape: f32[1,10], index: 4, kind: input, shape index: {}]   ;;  %s5505_s5 = inlined_call_operand.vmem [shape: f32[2,256,32], index: 5, kind: output, shape index: {0}]   ;;  %s5506_s6 = inlined_call_operand.hbm [shape: f32[2,1,32], index: 6, kind: output, shape index: {1}]   ;;  %s5507_s7 = inlined_call_operand.hbm [shape: f32[2,1,10], index: 7, kind: output, shape index: {2}]  }
   0x1   :  { %15 = vsyncpa [#allocation3 + $0x1], 0 }
   0x2   :  { %16 = vsyncpa [#allocation5], 0 }
   0x3   :  { %18 = vsyncpa [#allocation5 + $0x1], 0  ;;  %s4591_s24 = smov 0   ;;  %s4593_s25 = smov 0  }
   0x4   :  { %s4595_s26 = smov 0   ;;  %s4597_s27 = smov 0  }
   0x5 LB: > { %s4612_s28 = sadd.s32 4294967295, %s4544_s27   ;;  %s3295_s29 = sadd.s32 4294967294, %s4544_s27   ;;  %s4544_s27 = sphi %s4597_s27, %s5513_s27   ;;  %s4540_s26 = sphi %s4595_s26, %s5512_s26   ;;  %s4536_s25 = sphi %s4593_s25, %s5511_s25   ;;  %s4532_s24 = sphi %s4591_s24, %s5510_s24  }
   0x6   : > { %s4616_s30 = sadd.s32 1, %s4544_s27   ;;  %s167_s8 = sadd.s32 1, %s4540_s26 }
   0x7   : > { %s164_s9 = ssub.s32 %s4544_s27, %s4616_s30  ;;  %p177_p0 = scmp.ne.s32.totalorder %s4540_s26, %s4536_s25 }
   0x8   : > { %p165_p1 = scmp.eq.s32.totalorder %s164_s9, 0  ;;  %p178_p2 = scmp.eq.s32.totalorder %s4612_s28, 1 }
   0x9   : > { %p183_p3 = scmp.ne.s32.totalorder %s4536_s25, %s4532_s24  ;;  %p184_p4 = scmp.eq.s32.totalorder %s3295_s29, 1 }
   0xa   : > { %s4627_s10 = scalar_select %p165_p1, %s4540_s26, %s167_s8  }
   0xb   : > { %p4629_p5 = por %p178_p2, %p177_p0  ;;  %p4633_p6 = por %p184_p4, %p183_p3 }
   0xc   : > { %p3298_p7 = scmp.ge.s32.totalorder %s4544_s27, 1  ;;  %p248_p8 = scmp.lt.s32.totalorder %s4544_s27, 3 }
   0xe   : > { %p249_p9 = pnand %p3298_p7, %p248_p8 }
   0xf   : > { %vm449_vm0 = vcmask (!%p249_p9), 1041408   ;;  %v3433_v0 = vld [vmem:[%s5501_s1 + $0x10] sm:$0xf] (!%p249_p9)  ;;  %v3302_v1 = vld [vmem:[%s5501_s1 + $0x4] sm:$0xf] (!%p249_p9)  ;;  %p288_p10 = scmp.lt.s32.totalorder (!%p249_p9), %s4612_s28, 1 }
  0x10   : > { %252 = sbr.rel (%p249_p9) target bundleno = 791 (0x317), region = 40  ;;  %v4646_v2 = vpack.c.bf16 (!%p249_p9), %v3433_v0, %v3433_v0  ;;  %v399_v3 = vpack.c.bf16 (!%p249_p9), %v3302_v1, %v3302_v1  ;;  %v3482_v4 = vld [vmem:[%s5501_s1 + $0x14] sm:$0xf] (!%p249_p9)  ;;  %v331_v5 = vld [vmem:[%s5501_s1] sm:$0xf] (!%p249_p9)  ;;  %vm400_vm1 = vcmask (!%p249_p9), 31744  }
  0x11   : > { %v1762_v6 = vpack.c.bf16 (!%p249_p9), %v3482_v4, %v3482_v4  ;;  %v348_v7 = vpack.c.bf16 (!%p249_p9), %v331_v5, %v331_v5  ;;  %v3531_v10 = vld [vmem:[%s5501_s1 + $0x18] sm:$0xf] (!%p249_p9)  ;;  %v3335_v11 = vld [vmem:[%s5501_s1 + $0x8] sm:$0xf] (!%p249_p9)  ;;  %v3580_v61 = vld [vmem:[%s5501_s1 + $0x1c] sm:$0xf] (!%p249_p9) }
  0x12   : > { %4396 = vmatprep.subr.msk.bf16.mxu0 (!%p249_p9), %vm449_vm0, %v4646_v2  ;;  %4392 = vmatprep.subr.msk.bf16.mxu1 (!%p249_p9), %vm449_vm0, %v399_v3  ;;  %v4662_v8 = vsel (!%p249_p9), %vm449_vm0, %v4646_v2, 0  ;;  %v451_v9 = vsel (!%p249_p9), %vm449_vm0, %v399_v3, 0  ;;  %v4694_v25 = vpack.c.bf16 (!%p249_p9), %v3531_v10, %v3531_v10  ;;  %v4699_v27 = vpack.c.bf16 (!%p249_p9), %v3335_v11, %v3335_v11  ;;  %s3648_s9 = sshll.u32 (!%p249_p9), %s4612_s28, 4  ;;  %s4549_s18 = smov (!%p249_p9), [#allocation2]  }
  0x13   : > { %3948 = vmatpush3.bf16.msra.mxu0 (!%p249_p9), %v4662_v8  ;;  %3812 = vmatpush3.bf16.msra.mxu1 (!%p249_p9), %v451_v9  ;;  %v1812_v23 = vsel (!%p249_p9), %vm449_vm0, %v1762_v6, 0  ;;  %v663_v26 = vsel (!%p249_p9), %vm449_vm0, %v348_v7, 0  ;;  %v4796_v3 = vpack.c.bf16 (!%p249_p9), %v3580_v61, %v3580_v61  ;;  %vm4547_vm2 = vmmov (!%p249_p9), 0   ;;  %s5428_s15 = scalar_lea.hbm (!%p249_p9), %s5506_s6, %s3648_s9 }
  0x14   : > { %4398 = vmatprep.subr.msk.bf16.mxu0 (!%p249_p9), %vm449_vm0, %v1762_v6  ;;  %4393 = vmatprep.subr.msk.bf16.mxu1 (!%p249_p9), %vm449_vm0, %v348_v7  ;;  %v2108_v1 = vsel (!%p249_p9), %vm449_vm0, %v4694_v25, 0  ;;  %vm2964_vm3 = vcmask (!%p249_p9), 261120   ;;  %vm3067_vm4 = vcmask (!%p249_p9), 253952  }
  0x17   : > { %s4655_s21 = scalar_select %p288_p10, %s4612_s28, 1 }
  0x19   : > { %s4402_s22 = smul.u32 432, %s4655_s21  ;;  %s3652_s19 = sshll.u32 %s4655_s21, 8 }
  0x1a   : > { %s5240_s23 = scalar_lea.vmem %s5505_s5, %s3652_s19  ;;  %s5418_s21 = sand.u32 1, %s4536_s25  }
  0x1b   : > { %s4672_s8 = scalar_lea.vmem %s5500_s0, %s4402_s22  ;;  %s281_s29 = scalar_lea.vmem [#allocation2], %s5418_s21 }
  0x1c   : > { %v349_v12 = vld [vmem:[%s4672_s8 + $0x1] sm:$0xff]  ;;  %v350_v13 = vld [vmem:[%s4672_s8 + $0x9] sm:$0xff]  ;;  %v3401_v14 = vld [vmem:[%s4672_s8 + $0x19] sm:$0xff]  ;;  %s3155_s16 = scalar_lea.sflag [#allocation3], %s5418_s21  ;;  %s4454_s19 = sshll.u32 %s4549_s18, 4  ;;  %s4455_s19 = int_to_ptr.vmem [resolvable:$false] %s4454_s19 }
  0x1d   : > { %v383_v15 = vpack.c.bf16 %v350_v13, %v349_v12  ;;  %v3402_v16 = vld [vmem:[%s4672_s8 + $0x21] sm:$0xff]  ;;  %v3403_v17 = vld [vmem:[%s4672_s8 + $0x31] sm:$0xff]  ;;  %v3404_v18 = vld [vmem:[%s4672_s8 + $0x39] sm:$0xff]  ;;  %s4456_s20 = scalar_lea.vmem %s4455_s19, 32 }
  0x1e   : > { %v1451_v19 = vpack.c.bf16 %v3402_v16, %v3401_v14  ;;  %v4686_v20 = vpack.c.bf16 %v3404_v18, %v3403_v17  ;;  %v3405_v21 = vld [vmem:[%s4672_s8 + $0x49] sm:$0xff]  ;;  %v3406_v22 = vld [vmem:[%s4672_s8 + $0x51] sm:$0xff]  ;;  %v3407_v28 = vld [vmem:[%s4672_s8 + $0x61] sm:$0xff] }
  0x1f   : > { %3813 = vmatprep.mubr.msk.bf16.mxu1 %vm400_vm1, %v383_v15  ;;  %v4692_v24 = vpack.c.bf16 %v3406_v22, %v3405_v21  ;;  %v3408_v29 = vld [vmem:[%s4672_s8 + $0x69] sm:$0xff]  ;;  %v3409_v30 = vld [vmem:[%s4672_s8 + $0x79] sm:$0xff]  ;;  %v3410_v31 = vld [vmem:[%s4672_s8 + $0x81] sm:$0xff] }
  0x20   : > { %3949 = vmatprep.mubr.msk.bf16.mxu0 %vm400_vm1, %v1451_v19  ;;  %3814 = vmatmul.mubr.msk.bf16.vlgmr.msra.gmra.mrb[0].mxu1 %vm400_vm1, %v1451_v19  ;;  %v4715_v32 = vpack.c.bf16 %v3408_v29, %v3407_v28  ;;  %v4717_v33 = vpack.c.bf16 %v3410_v31, %v3409_v30  ;;  %v3411_v34 = vld [vmem:[%s4672_s8 + $0x91] sm:$0xff]  ;;  %v3412_v35 = vld [vmem:[%s4672_s8 + $0x99] sm:$0xff]  ;;  %v3413_v36 = vld [vmem:[%s4672_s8 + $0xa9] sm:$0xff] }
  0x21   : > { %3950 = vmatmul.mubr.msk.bf16.vlgmr.msra.gmra.mrb[0].mxu0 %vm400_vm1, %v4686_v20  ;;  %3817 = vmatprep.mubr.msk.bf16.mxu1 %vm400_vm1, %v4686_v20  ;;  %v3414_v37 = vld [vmem:[%s4672_s8 + $0xb1] sm:$0xff]  ;;  %v4731_v38 = vpack.c.bf16 %v3412_v35, %v3411_v34  ;;  %v3415_v40 = vld [vmem:[%s4672_s8 + $0xc1] sm:$0xff]  ;;  %v3416_v41 = vld [vmem:[%s4672_s8 + $0xc9] sm:$0xff] }
  0x22   : > { %3982 = vmatpush3.bf16.msra.mxu0 %v1812_v23  ;;  %3953 = vmatprep.mubr.msk.bf16.mxu0 %vm400_vm1, %v4692_v24  ;;  %v4733_v39 = vpack.c.bf16 %v3414_v37, %v3413_v36  ;;  %v3417_v42 = vld [vmem:[%s4672_s8 + $0xd9] sm:$0xff]  ;;  %v3418_v43 = vld [vmem:[%s4672_s8 + $0xe1] sm:$0xff]  ;;  %v4747_v44 = vpack.c.bf16 %v3416_v41, %v3415_v40  ;;  %v3419_v46 = vld [vmem:[%s4672_s8 + $0xf1] sm:$0xff] }
  0x23   : > { %3846 = vmatpush3.bf16.msra.mxu1 %v663_v26  ;;  %4399 = vmatprep.subr.msk.bf16.mxu0 %vm449_vm0, %v4694_v25  ;;  %v4749_v45 = vpack.c.bf16 %v3418_v43, %v3417_v42  ;;  %v3420_v47 = vld [vmem:[%s4672_s8 + $0xf9] sm:$0xff]  ;;  %v3451_v49 = vld [vmem:[%s4672_s8 + $0x22] sm:$0xff]  ;;  %v372_v53 = vld [vmem:[%s4672_s8 + $0x111] sm:$0xff] }
  0x24   : > { %4394 = vmatprep.subr.msk.bf16.mxu1 %vm449_vm0, %v4699_v27  ;;  %v3450_v48 = vld [vmem:[%s4672_s8 + $0x1a] sm:$0xff]  ;;  %v4763_v50 = vpack.c.bf16 %v3420_v47, %v3419_v46  ;;  %v371_v52 = vld [vmem:[%s4672_s8 + $0x109] sm:$0xff]  ;;  %v3452_v54 = vld [vmem:[%s4672_s8 + $0x32] sm:$0xff] }
  0x25   : > { %v4765_v51 = vpack.c.bf16 %v3451_v49, %v3450_v48  ;;  %v3453_v55 = vld [vmem:[%s4672_s8 + $0x3a] sm:$0xff]  ;;  %v374_v57 = vld [vmem:[%s4672_s8 + $0x129] sm:$0xff]  ;;  %v3455_v59 = vld [vmem:[%s4672_s8 + $0x52] sm:$0xff]  ;;  %v4783_v60 = vpack.c.bf16 %v372_v53, %v371_v52  ;;  %v926_v53 = vsel %vm449_vm0, %v4699_v27, 0 }
  0x26   : > { %v373_v56 = vld [vmem:[%s4672_s8 + $0x121] sm:$0xff]  ;;  %v3454_v58 = vld [vmem:[%s4672_s8 + $0x4a] sm:$0xff]  ;;  %v4788_v62 = vpack.c.bf16 %v3453_v55, %v3452_v54  ;;  %v375_v4 = vld [vmem:[%s4672_s8 + $0x139] sm:$0xff] }
  0x27   : > { %v4790_v63 = vpack.c.bf16 %v374_v57, %v373_v56  ;;  %v4792_v0 = vpack.c.bf16 %v3455_v59, %v3454_v58  ;;  %v376_v5 = vld [vmem:[%s4672_s8 + $0x141] sm:$0xff]  ;;  %v3457_v7 = vld [vmem:[%s4672_s8 + $0x6a] sm:$0xff]  ;;  %v378_v10 = vld [vmem:[%s4672_s8 + $0x159] sm:$0xff] }
  0x28   : > { %3818 = vmatmul.mubr.msk.bf16.gmra.mrb[4].mxu1 %vm400_vm1, %v4692_v24  ;;  %v3456_v6 = vld [vmem:[%s4672_s8 + $0x62] sm:$0xff]  ;;  %v377_v9 = vld [vmem:[%s4672_s8 + $0x151] sm:$0xff]  ;;  %v3458_v11 = vld [vmem:[%s4672_s8 + $0x7a] sm:$0xff]  ;;  %v4816_v13 = vpack.c.bf16 %v376_v5, %v375_v4 }
  0x29   : > { %3954 = vmatmul.mubr.msk.bf16.gmra.mrb[4].mxu0 %vm400_vm1, %v4715_v32  ;;  %3821 = vmatprep.mubr.msk.bf16.mxu1 %vm400_vm1, %v4715_v32  ;;  %v3459_v12 = vld [vmem:[%s4672_s8 + $0x82] sm:$0xff]  ;;  %v4818_v14 = vpack.c.bf16 %v3457_v7, %v3456_v6  ;;  %v4820_v15 = vpack.c.bf16 %v378_v10, %v377_v9  ;;  %v380_v18 = vld [vmem:[%s4672_s8 + $0x171] sm:$0xff]  ;;  %v3461_v21 = vld [vmem:[%s4672_s8 + $0x9a] sm:$0xff] }
  0x2a   : > { %3957 = vmatprep.mubr.msk.bf16.mxu0 %vm400_vm1, %v4717_v33  ;;  %v4822_v16 = vpack.c.bf16 %v3459_v12, %v3458_v11  ;;  %v379_v17 = vld [vmem:[%s4672_s8 + $0x169] sm:$0xff]  ;;  %v3460_v19 = vld [vmem:[%s4672_s8 + $0x92] sm:$0xff]  ;;  %v299_v22 = vld [vmem:[%s4672_s8] sm:$0xff] }
  0x2b   : > { %v300_v23 = vld [vmem:[%s4672_s8 + $0x8] sm:$0xff]  ;;  %v3463_v26 = vld [vmem:[%s4672_s8 + $0xb2] sm:$0xff]  ;;  %v4840_v28 = vpack.c.bf16 %v380_v18, %v379_v17  ;;  %v4842_v29 = vpack.c.bf16 %v3461_v21, %v3460_v19  ;;  %v302_v35 = vld [vmem:[%s4672_s8 + $0x20] sm:$0xff] }
  0x2c   : > { %v3462_v25 = vld [vmem:[%s4672_s8 + $0xaa] sm:$0xff]  ;;  %v332_v30 = vpack.c.bf16 %v300_v23, %v299_v22  ;;  %v301_v34 = vld [vmem:[%s4672_s8 + $0x18] sm:$0xff]  ;;  %v3464_v36 = vld [vmem:[%s4672_s8 + $0xc2] sm:$0xff] }
  0x2d   : > { %v4844_v31 = vpack.c.bf16 %v3463_v26, %v3462_v25  ;;  %v3465_v37 = vld [vmem:[%s4672_s8 + $0xca] sm:$0xff]  ;;  %v304_v41 = vld [vmem:[%s4672_s8 + $0x38] sm:$0xff]  ;;  %v3467_v43 = vld [vmem:[%s4672_s8 + $0xe2] sm:$0xff]  ;;  %v4861_v46 = vpack.c.bf16 %v302_v35, %v301_v34 }
  0x2e   : > { %v303_v40 = vld [vmem:[%s4672_s8 + $0x30] sm:$0xff]  ;;  %v3466_v42 = vld [vmem:[%s4672_s8 + $0xda] sm:$0xff]  ;;  %v3384_v47 = vld [vmem:[%s5501_s1 + $0xc] sm:$0xf]  ;;  %v4866_v48 = vpack.c.bf16 %v3465_v37, %v3464_v36 }
  0x2f   : > { %v4868_v49 = vpack.c.bf16 %v304_v41, %v303_v40  ;;  %v4870_v52 = vpack.c.bf16 %v3467_v43, %v3466_v42  ;;  %v4874_v54 = vpack.c.bf16 %v3384_v47, %v3384_v47  ;;  %v305_v55 = vld [vmem:[%s4672_s8 + $0x48] sm:$0xff]  ;;  %v306_v56 = vld [vmem:[%s4672_s8 + $0x50] sm:$0xff]  ;;  %v3469_v27 = vld [vmem:[%s4672_s8 + $0xfa] sm:$0xff] }
  0x30   : > { %3822 = vmatmul.mubr.msk.bf16.gmra.mrb[8].mxu1 %vm400_vm1, %v4717_v33  ;;  %v3468_v57 = vld [vmem:[%s4672_s8 + $0xf2] sm:$0xff]  ;;  %v307_v58 = vld [vmem:[%s4672_s8 + $0x60] sm:$0xff]  ;;  %v308_v59 = vld [vmem:[%s4672_s8 + $0x68] sm:$0xff]  ;;  %v4894_v4 = vpack.c.bf16 %v306_v56, %v305_v55 }
  0x31   : > { %3958 = vmatmul.mubr.msk.bf16.gmra.mrb[8].mxu0 %vm400_vm1, %v4731_v38  ;;  %3825 = vmatprep.mubr.msk.bf16.mxu1 %vm400_vm1, %v4731_v38  ;;  %v3470_v61 = vld [vmem:[%s4672_s8 + $0x10a] sm:$0xff]  ;;  %v4896_v5 = vpack.c.bf16 %v3469_v27, %v3468_v57  ;;  %v4898_v6 = vpack.c.bf16 %v308_v59, %v307_v58  ;;  %v309_v9 = vld [vmem:[%s4672_s8 + $0x78] sm:$0xff]  ;;  %v310_v10 = vld [vmem:[%s4672_s8 + $0x80] sm:$0xff] }
  0x32   : > { %3961 = vmatprep.mubr.msk.bf16.mxu0 %vm400_vm1, %v4733_v39  ;;  %v3472_v11 = vld [vmem:[%s4672_s8 + $0x122] sm:$0xff]  ;;  %v3473_v12 = vld [vmem:[%s4672_s8 + $0x12a] sm:$0xff]  ;;  %v312_v18 = vld [vmem:[%s4672_s8 + $0x98] sm:$0xff]  ;;  %v4918_v22 = vpack.c.bf16 %v310_v10, %v309_v9 }
  0x33   : > { %v311_v17 = vld [vmem:[%s4672_s8 + $0x90] sm:$0xff]  ;;  %v3474_v19 = vld [vmem:[%s4672_s8 + $0x13a] sm:$0xff]  ;;  %v3475_v21 = vld [vmem:[%s4672_s8 + $0x142] sm:$0xff]  ;;  %v4920_v23 = vpack.c.bf16 %v3473_v12, %v3472_v11 }
  0x34   : > { %v4922_v25 = vpack.c.bf16 %v312_v18, %v311_v17  ;;  %v4924_v26 = vpack.c.bf16 %v3475_v21, %v3474_v19  ;;  %v314_v34 = vld [vmem:[%s4672_s8 + $0xb0] sm:$0xff]  ;;  %v3477_v36 = vld [vmem:[%s4672_s8 + $0x15a] sm:$0xff]  ;;  %v316_v40 = vld [vmem:[%s4672_s8 + $0xc8] sm:$0xff] }
  0x35   : > { %v3476_v35 = vld [vmem:[%s4672_s8 + $0x152] sm:$0xff]  ;;  %v315_v37 = vld [vmem:[%s4672_s8 + $0xc0] sm:$0xff]  ;;  %v3478_v41 = vld [vmem:[%s4672_s8 + $0x16a] sm:$0xff] }
  0x36   : > { %v3479_v42 = vld [vmem:[%s4672_s8 + $0x172] sm:$0xff]  ;;  %v4944_v47 = vpack.c.bf16 %v3477_v36, %v3476_v35  ;;  %v318_v57 = vld [vmem:[%s4672_s8 + $0xe0] sm:$0xff]  ;;  %v3481_v58 = vld [vmem:[%s4672_s8 + $0x18a] sm:$0xff] }
  0x37   : > { %v4948_v55 = vpack.c.bf16 %v3479_v42, %v3478_v41  ;;  %v317_v56 = vld [vmem:[%s4672_s8 + $0xd8] sm:$0xff]  ;;  %v3480_v27 = vld [vmem:[%s4672_s8 + $0x182] sm:$0xff]  ;;  %v319_v59 = vld [vmem:[%s4672_s8 + $0xf0] sm:$0xff] }
  0x38   : > { %3826 = vmatmul.mubr.msk.bf16.gmra.mrb[12].mxu1 %vm400_vm1, %v4733_v39  ;;  %v4966_v9 = vpack.c.bf16 %v3481_v58, %v3480_v27  ;;  %v321_v11 = vld [vmem:[%s4672_s8 + $0x108] sm:$0xff]  ;;  %v322_v12 = vld [vmem:[%s4672_s8 + $0x110] sm:$0xff]  ;;  %v323_v17 = vld [vmem:[%s4672_s8 + $0x120] sm:$0xff] }
  0x39   : > { %3962 = vmatmul.mubr.msk.bf16.gmra.mrb[12].mxu0 %vm400_vm1, %v4747_v44  ;;  %3829 = vmatprep.mubr.msk.bf16.mxu1 %vm400_vm1, %v4747_v44  ;;  %v324_v18 = vld [vmem:[%s4672_s8 + $0x128] sm:$0xff]  ;;  %v4982_v19 = vpack.c.bf16 %v322_v12, %v321_v11  ;;  %v3629_v21 = vld [vmem:[%s5501_s1 + $0x20] sm:$0xf]  ;;  %v325_v36 = vld [vmem:[%s4672_s8 + $0x138] sm:$0xff]  ;;  %v1222_v11 = vsel %vm449_vm0, %v4874_v54, 0 }
  0x3a   : > { %3965 = vmatprep.mubr.msk.bf16.mxu0 %vm400_vm1, %v4749_v45  ;;  %v2648_v35 = vpack.c.bf16 %v3629_v21, %v3629_v21  ;;  %v826_v27 = vld [vmem:[%s4672_s8 + $0x2] sm:$0xff]  ;;  %v827_v58 = vld [vmem:[%s4672_s8 + $0xa] sm:$0xff]  ;;  %v3529_v12 = vld [vmem:[%s4672_s8 + $0x198] sm:$0xff] }
  0x3c   : > { %v2698_v21 = vsel %vm449_vm0, %v2648_v35, 0 }
  0x40   : > { %3830 = vmatmul.mubr.msk.bf16.gmra.mrb[16].mxu1 %vm400_vm1, %v4749_v45 }
  0x41   : > { %3966 = vmatmul.mubr.msk.bf16.gmra.mrb[16].mxu0 %vm400_vm1, %v4763_v50  ;;  %3833 = vmatprep.mubr.msk.bf16.mxu1 %vm400_vm1, %v4763_v50 }
  0x42   : > { %3983 = vmatprep.mubr.msk.bf16.mxu0 %vm400_vm1, %v4765_v51 }
  0x48   : > { %3834 = vmatmul.mubr.msk.bf16.gmra.mrb[20].mxu1 %vm400_vm1, %v4783_v60 }
  0x49   : > { %3984 = vmatmul.mubr.msk.bf16.vlgmr.msra.gmra.mrb[0].mxu0 %vm400_vm1, %v4788_v62  ;;  %3837 = vmatprep.mubr.msk.bf16.mxu1 %vm400_vm1, %v4790_v63 }
  0x4a   : > { %4016 = vmatpush3.bf16.msra.mxu0 %v2108_v1  ;;  %3987 = vmatprep.mubr.msk.bf16.mxu0 %vm400_vm1, %v4792_v0  ;;  %v3471_v1 = vld [vmem:[%s4672_s8 + $0x112] sm:$0xff] }
  0x4b   : > { %4400 = vmatprep.subr.msk.bf16.mxu0 %vm449_vm0, %v4796_v3  ;;  %v4900_v7 = vpack.c.bf16 %v3471_v1, %v3470_v61  ;;  %v320_v61 = vld [vmem:[%s4672_s8 + $0xf8] sm:$0xff]  ;;  %v4964_v1 = vpack.c.bf16 %v318_v57, %v317_v56  ;;  %v329_v56 = vld [vmem:[%s4672_s8 + $0x168] sm:$0xff]  ;;  %v330_v57 = vld [vmem:[%s4672_s8 + $0x170] sm:$0xff] }
  0x4c   : > { %v4968_v10 = vpack.c.bf16 %v320_v61, %v319_v59  ;;  %v5020_v59 = vpack.c.bf16 %v330_v57, %v329_v56  ;;  %v860_v61 = vpack.c.bf16 %v827_v58, %v826_v27 }
  0x50   : > { %3838 = vmatmul.mubr.msk.bf16.gmra.mrb[24].mxu1 %vm400_vm1, %v4816_v13 }
  0x51   : > { %3988 = vmatmul.mubr.msk.bf16.gmra.mrb[4].mxu0 %vm400_vm1, %v4818_v14  ;;  %3841 = vmatprep.mubr.msk.bf16.mxu1 %vm400_vm1, %v4820_v15 }
  0x52   : > { %3991 = vmatprep.mubr.msk.bf16.mxu0 %vm400_vm1, %v4822_v16 }
  0x58   : > { %3842 = vmatmul.mubr.msk.bf16.gmra.mrb[28].mxu1 %vm400_vm1, %v4840_v28 }
  0x59   : > { %3992 = vmatmul.mubr.msk.bf16.gmra.mrb[8].mxu0 %vm400_vm1, %v4842_v29  ;;  %3847 = vmatprep.mubr.msk.bf16.mxu1 %vm400_vm1, %v332_v30  ;;  %v313_v30 = vld [vmem:[%s4672_s8 + $0xa8] sm:$0xff] }
  0x5a   : > { %3995 = vmatprep.mubr.msk.bf16.mxu0 %vm400_vm1, %v4844_v31  ;;  %v4942_v43 = vpack.c.bf16 %v314_v34, %v313_v30  ;;  %v4987_v30 = vpack.c.bf16 %v324_v18, %v323_v17  ;;  %v2403_v34 = vsel %vm449_vm0, %v4796_v3, 0  ;;  %v327_v3 = vld [vmem:[%s4672_s8 + $0x150] sm:$0xff]  ;;  %v3530_v17 = vld [vmem:[%s4672_s8 + $0x1a0] sm:$0xff] }
  0x5b   : > { %v2057_v18 = vpack.c.bf16 %v3530_v17, %v3529_v12 }
  0x60   : > { %3848 = vmatmul.mubr.msk.bf16.vlgmr.msra.gmra.mrb[0].mxu1 %vm400_vm1, %v4861_v46 }
  0x61   : > { %3996 = vmatmul.mubr.msk.bf16.gmra.mrb[12].mxu0 %vm400_vm1, %v4866_v48  ;;  %3851 = vmatprep.mubr.msk.bf16.mxu1 %vm400_vm1, %v4868_v49 }
  0x62   : > { %3999 = vmatprep.mubr.msk.bf16.mxu0 %vm400_vm1, %v4870_v52  ;;  %3880 = vmatpush3.bf16.msra.mxu1 %v926_v53  ;;  %v4946_v53 = vpack.c.bf16 %v316_v40, %v315_v37  ;;  %v326_v37 = vld [vmem:[%s4672_s8 + $0x140] sm:$0xff]  ;;  %v328_v40 = vld [vmem:[%s4672_s8 + $0x158] sm:$0xff] }
  0x63   : > { %4395 = vmatprep.subr.msk.bf16.mxu1 %vm449_vm0, %v4874_v54  ;;  %v5004_v41 = vpack.c.bf16 %v326_v37, %v325_v36  ;;  %v5006_v42 = vpack.c.bf16 %v328_v40, %v327_v3 }
  0x68   : > { %3852 = vmatmul.mubr.msk.bf16.gmra.mrb[4].mxu1 %vm400_vm1, %v4894_v4 }
  0x69   : > { %4000 = vmatmul.mubr.msk.bf16.gmra.mrb[16].mxu0 %vm400_vm1, %v4896_v5  ;;  %3855 = vmatprep.mubr.msk.bf16.mxu1 %vm400_vm1, %v4898_v6 }
  0x6a   : > { %4003 = vmatprep.mubr.msk.bf16.mxu0 %vm400_vm1, %v4900_v7 }
  0x70   : > { %3856 = vmatmul.mubr.msk.bf16.gmra.mrb[8].mxu1 %vm400_vm1, %v4918_v22 }
  0x71   : > { %4004 = vmatmul.mubr.msk.bf16.gmra.mrb[20].mxu0 %vm400_vm1, %v4920_v23  ;;  %3859 = vmatprep.mubr.msk.bf16.mxu1 %vm400_vm1, %v4922_v25 }
  0x72   : > { %4007 = vmatprep.mubr.msk.bf16.mxu0 %vm400_vm1, %v4924_v26 }
  0x78   : > { %3860 = vmatmul.mubr.msk.bf16.gmra.mrb[12].mxu1 %vm400_vm1, %v4942_v43 }
  0x79   : > { %4008 = vmatmul.mubr.msk.bf16.gmra.mrb[24].mxu0 %vm400_vm1, %v4944_v47  ;;  %3863 = vmatprep.mubr.msk.bf16.mxu1 %vm400_vm1, %v4946_v53 }
  0x7a   : > { %4011 = vmatprep.mubr.msk.bf16.mxu0 %vm400_vm1, %v4948_v55 }
  0x80   : > { %3864 = vmatmul.mubr.msk.bf16.gmra.mrb[16].mxu1 %vm400_vm1, %v4964_v1 }
  0x81   : > { %4012 = vmatmul.mubr.msk.bf16.gmra.mrb[28].mxu0 %vm400_vm1, %v4966_v9  ;;  %3867 = vmatprep.mubr.msk.bf16.mxu1 %vm400_vm1, %v4968_v10 }
  0x82   : > { %4017 = vmatprep.mubr.msk.bf16.mxu0 %vm400_vm1, %v4868_v49 }
  0x88   : > { %3868 = vmatmul.mubr.msk.bf16.gmra.mrb[20].mxu1 %vm400_vm1, %v4982_v19 }
  0x89   : > { %4018 = vmatmul.mubr.msk.bf16.vlgmr.msra.gmra.mrb[0].mxu0 %vm400_vm1, %v4894_v4  ;;  %3871 = vmatprep.mubr.msk.bf16.mxu1 %vm400_vm1, %v4987_v30 }
  0x8a   : > { %4050 = vmatpush3.bf16.msra.mxu0 %v2403_v34  ;;  %4021 = vmatprep.mubr.msk.bf16.mxu0 %vm400_vm1, %v4898_v6 }
  0x8b   : > { %4401 = vmatprep.subr.msk.bf16.mxu0 %vm449_vm0, %v2648_v35 }
  0x90   : > { %3872 = vmatmul.mubr.msk.bf16.gmra.mrb[24].mxu1 %vm400_vm1, %v5004_v41 }
  0x91   : > { %4022 = vmatmul.mubr.msk.bf16.gmra.mrb[4].mxu0 %vm400_vm1, %v4918_v22  ;;  %3875 = vmatprep.mubr.msk.bf16.mxu1 %vm400_vm1, %v5006_v42 }
  0x92   : > { %4025 = vmatprep.mubr.msk.bf16.mxu0 %vm400_vm1, %v4922_v25 }
  0x98   : > { %3876 = vmatmul.mubr.msk.bf16.gmra.mrb[28].mxu1 %vm400_vm1, %v5020_v59 }
  0x99   : > { %4026 = vmatmul.mubr.msk.bf16.gmra.mrb[8].mxu0 %vm400_vm1, %v4942_v43  ;;  %3881 = vmatprep.mubr.msk.bf16.mxu1 %vm400_vm1, %v860_v61 }
  0x9a   : > { %4029 = vmatprep.mubr.msk.bf16.mxu0 %vm400_vm1, %v4946_v53 }
  0xa0   : > { %3882 = vmatmul.mubr.msk.bf16.vlgmr.msra.gmra.mrb[0].mxu1 %vm400_vm1, %v4765_v51  ;;  %v3528_v51 = vld [vmem:[%s4672_s8 + $0x188] sm:$0xff] }
  0xa1   : > { %4030 = vmatmul.mubr.msk.bf16.gmra.mrb[12].mxu0 %vm400_vm1, %v4964_v1  ;;  %3885 = vmatprep.mubr.msk.bf16.mxu1 %vm400_vm1, %v4788_v62 }
  0xa2   : > { %4033 = vmatprep.mubr.msk.bf16.mxu0 %vm400_vm1, %v4968_v10  ;;  %3914 = vmatpush3.bf16.msra.mxu1 %v1222_v11 }
  0xa3   : > { %4397 = vmatprep.subr.msk.bf16.mxu1 %vm449_vm0, %v4646_v2  ;;  %v3527_v2 = vld [vmem:[%s4672_s8 + $0x180] sm:$0xff] }
  0xa4   : > { %v2056_v54 = vpack.c.bf16 %v3528_v51, %v3527_v2 }
  0xa8   : > { %3886 = vmatmul.mubr.msk.bf16.gmra.mrb[4].mxu1 %vm400_vm1, %v4792_v0 }
  0xa9   : > { %4034 = vmatmul.mubr.msk.bf16.gmra.mrb[16].mxu0 %vm400_vm1, %v4982_v19  ;;  %3889 = vmatprep.mubr.msk.bf16.mxu1 %vm400_vm1, %v4818_v14 }
  0xaa   : > { %4037 = vmatprep.mubr.msk.bf16.mxu0 %vm400_vm1, %v4987_v30 }
  0xb0   : > { %3890 = vmatmul.mubr.msk.bf16.gmra.mrb[8].mxu1 %vm400_vm1, %v4822_v16 }
  0xb1   : > { %4038 = vmatmul.mubr.msk.bf16.gmra.mrb[20].mxu0 %vm400_vm1, %v5004_v41  ;;  %3893 = vmatprep.mubr.msk.bf16.mxu1 %vm400_vm1, %v4842_v29 }
  0xb2   : > { %4041 = vmatprep.mubr.msk.bf16.mxu0 %vm400_vm1, %v5006_v42 }
  0xb8   : > { %3894 = vmatmul.mubr.msk.bf16.gmra.mrb[12].mxu1 %vm400_vm1, %v4844_v31 }
  0xb9   : > { %4042 = vmatmul.mubr.msk.bf16.gmra.mrb[24].mxu0 %vm400_vm1, %v5020_v59  ;;  %3897 = vmatprep.mubr.msk.bf16.mxu1 %vm400_vm1, %v4866_v48 }
  0xba   : > { %4045 = vmatprep.mubr.msk.bf16.mxu0 %vm400_vm1, %v2056_v54 }
  0xc0   : > { %3898 = vmatmul.mubr.msk.bf16.gmra.mrb[16].mxu1 %vm400_vm1, %v4870_v52 }
  0xc1   : > { %4046 = vmatmul.mubr.msk.bf16.gmra.mrb[28].mxu0 %vm400_vm1, %v2057_v18  ;;  %3901 = vmatprep.mubr.msk.bf16.mxu1 %vm400_vm1, %v4896_v5 }
  0xc2   : > { %4051 = vmatprep.mubr.msk.bf16.mxu0 %vm400_vm1, %v4686_v20  ;;  %v3577_v20 = vld [vmem:[%s4672_s8 + $0x189] sm:$0xff] }
  0xc8   : > { %3902 = vmatmul.mubr.msk.bf16.gmra.mrb[20].mxu1 %vm400_vm1, %v4900_v7 }
  0xc9   : > { %4052 = vmatmul.mubr.msk.bf16.vlgmr.msra.gmra.mrb[0].mxu0 %vm400_vm1, %v4692_v24  ;;  %3905 = vmatprep.mubr.msk.bf16.mxu1 %vm400_vm1, %v4920_v23 }
  0xca   : > { %4084 = vmatpush3.bf16.msra.mxu0 %v2698_v21  ;;  %4055 = vmatprep.mubr.msk.bf16.mxu0 %vm400_vm1, %v4715_v32  ;;  %v3578_v32 = vld [vmem:[%s4672_s8 + $0x199] sm:$0xff] }
  0xd0   : > { %3906 = vmatmul.mubr.msk.bf16.gmra.mrb[24].mxu1 %vm400_vm1, %v4924_v26 }
  0xd1   : > { %4056 = vmatmul.mubr.msk.bf16.gmra.mrb[4].mxu0 %vm400_vm1, %v4717_v33  ;;  %3909 = vmatprep.mubr.msk.bf16.mxu1 %vm400_vm1, %v4944_v47  ;;  %v3579_v33 = vld [vmem:[%s4672_s8 + $0x1a1] sm:$0xff] }
  0xd2   : > { %4059 = vmatprep.mubr.msk.bf16.mxu0 %vm400_vm1, %v4731_v38  ;;  %v2352_v38 = vpack.c.bf16 %v3579_v33, %v3578_v32 }
  0xd8   : > { %3910 = vmatmul.mubr.msk.bf16.gmra.mrb[28].mxu1 %vm400_vm1, %v4948_v55 }
  0xd9   : > { %4060 = vmatmul.mubr.msk.bf16.gmra.mrb[8].mxu0 %vm400_vm1, %v4733_v39  ;;  %3915 = vmatprep.mubr.msk.bf16.mxu1 %vm400_vm1, %v4861_v46  ;;  %v3627_v39 = vld [vmem:[%s4672_s8 + $0x19a] sm:$0xff] }
  0xda   : > { %4063 = vmatprep.mubr.msk.bf16.mxu0 %vm400_vm1, %v4747_v44  ;;  %v3628_v44 = vld [vmem:[%s4672_s8 + $0x1a2] sm:$0xff] }
  0xe0   : > { %3916 = vmatmul.mubr.msk.bf16.vlgmr.msra.gmra.mrb[0].mxu1 %vm400_vm1, %v4868_v49 }
  0xe1   : > { %4064 = vmatmul.mubr.msk.bf16.gmra.mrb[12].mxu0 %vm400_vm1, %v4749_v45  ;;  %3919 = vmatprep.mubr.msk.bf16.mxu1 %vm400_vm1, %v4894_v4  ;;  %v2647_v45 = vpack.c.bf16 %v3628_v44, %v3627_v39 }
  0xe2   : > { %4067 = vmatprep.mubr.msk.bf16.mxu0 %vm400_vm1, %v4763_v50  ;;  %4135 = vmatpush3.bf16.msra.mxu1 %v4662_v8  ;;  %v3576_v8 = vld [vmem:[%s4672_s8 + $0x181] sm:$0xff]  ;;  %s3174_s8 = sshll.u32 %s281_s29, 4  ;;  %s3175_s8 = int_to_ptr.vmem [resolvable:$true] %s3174_s8 }
  0xe3   : > { %v2351_v24 = vpack.c.bf16 %v3577_v20, %v3576_v8  ;;  %v3069_v50 = vld [vmem:[%s5503_s3] sm:$0xff]  ;;  %s4450_s17 = scalar_lea.vmem %s3175_s8, 16  ;;  %p4457_p0 = scmp.lt.s32.totalorder %s3175_s8, %s4455_s19 }
  0xe4   : > { %p4451_p11 = scmp.ne.s32.totalorder %s3175_s8, %s4450_s17  ;;  %p4458_p1 = scmp.lt.s32.totalorder %s4456_s20, %s4450_s17 }
  0xe6   : > { %p4452_p12 = pnand %p4451_p11, %p4629_p5  ;;  %p4459_p2 = por %p4458_p1, %p4457_p0 }
  0xe8   : > { %3920 = vmatmul.mubr.msk.bf16.gmra.mrb[4].mxu1 %vm400_vm1, %v4898_v6  ;;  %p4453_p13 = pneg %p4452_p12 }
  0xe9   : > { %4068 = vmatmul.mubr.msk.bf16.gmra.mrb[16].mxu0 %vm400_vm1, %v4783_v60  ;;  %3923 = vmatprep.mubr.msk.bf16.mxu1 %vm400_vm1, %v4918_v22 }
  0xea   : > { %4071 = vmatprep.mubr.msk.bf16.mxu0 %vm400_vm1, %v4790_v63  ;;  %p4460_p3 = pnand %p4459_p2, %p4453_p13 }
  0xf0   : > { %3924 = vmatmul.mubr.msk.bf16.gmra.mrb[8].mxu1 %vm400_vm1, %v4922_v25 }
  0xf1   : > { %4072 = vmatmul.mubr.msk.bf16.gmra.mrb[20].mxu0 %vm400_vm1, %v4816_v13  ;;  %3927 = vmatprep.mubr.msk.bf16.mxu1 %vm400_vm1, %v4942_v43 }
  0xf2   : > { %4075 = vmatprep.mubr.msk.bf16.mxu0 %vm400_vm1, %v4820_v15 }
  0xf8   : > { %3928 = vmatmul.mubr.msk.bf16.gmra.mrb[12].mxu1 %vm400_vm1, %v4946_v53 }
  0xf9   : > { %4076 = vmatmul.mubr.msk.bf16.gmra.mrb[24].mxu0 %vm400_vm1, %v4840_v28  ;;  %3931 = vmatprep.mubr.msk.bf16.mxu1 %vm400_vm1, %v4964_v1 }
  0xfa   : > { %4079 = vmatprep.mubr.msk.bf16.mxu0 %vm400_vm1, %v2351_v24 }
 0x100   : > { %3932 = vmatmul.mubr.msk.bf16.gmra.mrb[16].mxu1 %vm400_vm1, %v4968_v10 }
 0x101   : > { %4080 = vmatmul.mubr.msk.bf16.gmra.mrb[28].mxu0 %vm400_vm1, %v2352_v38  ;;  %3935 = vmatprep.mubr.msk.bf16.mxu1 %vm400_vm1, %v4982_v19 }
 0x102   : > { %4085 = vmatprep.mubr.msk.bf16.mxu0 %vm400_vm1, %v4788_v62 }
 0x108   : > { %3936 = vmatmul.mubr.msk.bf16.gmra.mrb[20].mxu1 %vm400_vm1, %v4987_v30 }
 0x109   : > { %4086 = vmatmul.mubr.msk.bf16.vlgmr.msra.gmra.mrb[0].mxu0 %vm400_vm1, %v4792_v0  ;;  %3939 = vmatprep.mubr.msk.bf16.mxu1 %vm400_vm1, %v5004_v41  ;;  %v3071_v0 = vld [vmem:[%s5503_s3 + $0x10] sm:$0xff] }
 0x10a   : > { %4089 = vmatprep.mubr.msk.bf16.mxu0 %vm400_vm1, %v4818_v14 }
 0x110   : > { %3940 = vmatmul.mubr.msk.bf16.gmra.mrb[24].mxu1 %vm400_vm1, %v5006_v42 }
 0x111   : > { %4090 = vmatmul.mubr.msk.bf16.gmra.mrb[4].mxu0 %vm400_vm1, %v4822_v16  ;;  %3943 = vmatprep.mubr.msk.bf16.mxu1 %vm400_vm1, %v5020_v59 }
 0x112   : > { %4093 = vmatprep.mubr.msk.bf16.mxu0 %vm400_vm1, %v4842_v29 }
 0x118   : > { %3944 = vmatmul.mubr.msk.bf16.gmra.mrb[28].mxu1 %vm400_vm1, %v2056_v54 }
 0x119   : > { %4094 = vmatmul.mubr.msk.bf16.gmra.mrb[8].mxu0 %vm400_vm1, %v4844_v31  ;;  %3969 = vmatprep.mubr.msk.bf16.mxu1 %vm400_vm1, %v4783_v60  ;;  %v3070_v60 = vld [vmem:[%s5503_s3 + $0x8] sm:$0xff] }
 0x11a   : > { %4097 = vmatprep.mubr.msk.bf16.mxu0 %vm400_vm1, %v4866_v48  ;;  %v4129_v62 = vpack.c.bf16 %v3070_v60, %v3069_v50 }
 0x120   : > { %3970 = vmatmul.mubr.msk.bf16.vlgmr.msra.gmra.mrb[20].mxu1 %vm400_vm1, %v4790_v63  ;;  %v4546_v63 = vmov 0.0|0.0  }
 0x121   : > { %4098 = vmatmul.mubr.msk.bf16.gmra.mrb[12].mxu0 %vm400_vm1, %v4870_v52  ;;  %3973 = vmatprep.mubr.msk.bf16.mxu1 %vm400_vm1, %v4816_v13  ;;  %v3072_v13 = vld [vmem:[%s5503_s3 + $0x18] sm:$0xff] }
 0x122   : > { %4101 = vmatprep.mubr.msk.bf16.mxu0 %vm400_vm1, %v4896_v5  ;;  %4128 = vmatprep.subr.bf16.mxu1 %v4546_v63  ;;  %v4132_v14 = vpack.c.bf16 %v3072_v13, %v3071_v0 }
 0x123   : > { %4130 = vmatpush3.bf16.msra.mxu1 %v4129_v62 }
 0x124   : > { %4131 = vmatprep.subr.bf16.mxu1 %v4546_v63 }
 0x127   : > { %4133 = vmatpush3.bf16.msra.mxu1 %v4132_v14 }
 0x128   : > { %3974 = vmatmul.mubr.msk.bf16.gmra.mrb[24].mxu1 %vm400_vm1, %v4820_v15  ;;  %v4548_v15 = vmov 0.0  }
 0x129   : > { %4102 = vmatmul.mubr.msk.bf16.gmra.mrb[16].mxu0 %vm400_vm1, %v4900_v7  ;;  %3977 = vmatprep.mubr.msk.bf16.mxu1 %vm400_vm1, %v4840_v28 }
 0x12a   : > { %4105 = vmatprep.mubr.msk.bf16.mxu0 %vm400_vm1, %v4920_v23 }
 0x130   : > { %3978 = vmatmul.mubr.msk.bf16.gmra.mrb[28].mxu1 %vm400_vm1, %v2351_v24 }
 0x131   : > { %4106 = vmatmul.mubr.msk.bf16.gmra.mrb[20].mxu0 %vm400_vm1, %v4924_v26  ;;  %4125 = vmatprep.mubr.msk.f32.mxu1 %vm4547_vm2, %v4548_v15 }
 0x132   : > { %4109 = vmatprep.mubr.msk.bf16.mxu0 %vm400_vm1, %v4944_v47 }
 0x139   : > { %4110 = vmatmul.mubr.msk.bf16.gmra.mrb[24].mxu0 %vm400_vm1, %v4948_v55 }
 0x13a   : > { %4113 = vmatprep.mubr.msk.bf16.mxu0 %vm400_vm1, %v4966_v9  ;;  %v5233_v9 = vld [vmem:[%s5502_s2] ss:$0 sm:$0xff] }
 0x141   : > { %4114 = vmatmul.mubr.msk.bf16.gmra.mrb[28].mxu0 %vm400_vm1, %v2647_v45 }
 0x1b3   : > { %v3917_v16 = vpop.f32.mrb[0].mxu1 }
 0x1b4   : > { %v1258_v28 = vpop.f32.mrb[1].mxu1 }
 0x1b5   : > { %v3918_v29 = vpop.f32.mrb[2].mxu1 }
 0x1b6   : > { %v1261_v31 = vpop.f32.mrb[3].mxu1 }
 0x1bb   : > { %v3921_v46 = vpop.f32.mrb[4].mxu1 }
 0x1bc   : > { %v1274_v48 = vpop.f32.mrb[5].mxu1 }
 0x1bd   : > { %v3922_v49 = vpop.f32.mrb[6].mxu1 }
 0x1be   : > { %v1277_v52 = vpop.f32.mrb[7].mxu1 }
 0x1c3   : > { %v5206_v4 = vpop.f32.mrb[8].mxu1 }
 0x1c4   : > { %v5208_v5 = vpop.f32.mrb[9].mxu1 }
 0x1c5   : > { %v5210_v6 = vpop.f32.mrb[10].mxu1 }
 0x1c6   : > { %v5212_v7 = vpop.f32.mrb[11].mxu1 }
 0x1cb   : > { %v5214_v22 = vpop.f32.mrb[12].mxu1 }
 0x1cc   : > { %v5216_v23 = vpop.f32.mrb[13].mxu1 }
 0x1cd   : > { %v5218_v25 = vpop.f32.mrb[14].mxu1 }
 0x1ce   : > { %v5220_v26 = vpop.f32.mrb[15].mxu1 }
 0x1d3   : > { %v5222_v43 = vpop.f32.mrb[16].mxu1 }
 0x1d4   : > { %v5224_v47 = vpop.f32.mrb[17].mxu1 }
 0x1d5   : > { %v5226_v53 = vpop.f32.mrb[18].mxu1 }
 0x1d6   : > { %v5228_v55 = vpop.f32.mrb[19].mxu1 }
 0x1dc   : > { %v4087_v1 = vpop.f32.mrb[0].mxu0 }
 0x1dd   : > { %v4136_v10 = vadd.f32 %v4087_v1, %v3917_v16  ;;  %v2734_v19 = vpop.f32.mrb[1].mxu0 }
 0x1de   : > { %v4137_v30 = vadd.f32 %v2734_v19, %v1258_v28  ;;  %v4088_v34 = vpop.f32.mrb[2].mxu0 }
 0x1df   : > { %v2902_v35 = vadd.f32 %v4136_v10, %v5233_v9  ;;  %v4138_v36 = vadd.f32 %v4088_v34, %v3918_v29  ;;  %v2737_v37 = vpop.f32.mrb[3].mxu0 }
 0x1e0   : > { %v2900_v3 = vadd.f32 %v4137_v30, %v5233_v9  ;;  %v4139_v40 = vadd.f32 %v2737_v37, %v1261_v31 }
 0x1e1   : > { %v2934_v41 = vmax.f32 %v2902_v35, 0.0  ;;  %v2903_v42 = vadd.f32 %v4138_v36, %v5233_v9 }
 0x1e2   : > { %v2932_v56 = vmax.f32 %v2900_v3, 0.0  ;;  %v2901_v57 = vadd.f32 %v4139_v40, %v5233_v9 }
 0x1e3   : > { %2967 = vst.msk [vmem:[%s5240_s23 + $0x10] sm:$0xff] %vm2964_vm3, %v2934_v41  ;;  %v2935_v27 = vmax.f32 %v2903_v42, 0.0  ;;  %v3000_v20 = vsel %vm2964_vm3, %v2934_v41, 0.0 }
 0x1e4   : > { %2965 = vst.msk [vmem:[%s5240_s23] sm:$0xff] %vm2964_vm3, %v2932_v56  ;;  %v2933_v58 = vmax.f32 %v2901_v57, 0.0  ;;  %v4091_v59 = vpop.f32.mrb[4].mxu0  ;;  %v2997_v2 = vsel %vm2964_vm3, %v2932_v56, 0.0 }
 0x1e5   : > { %2968 = vst.msk [vmem:[%s5240_s23 + $0x18] sm:$0xff] %vm2964_vm3, %v2935_v27  ;;  %v4140_v61 = vadd.f32 %v4091_v59, %v3921_v46  ;;  %v2750_v11 = vpop.f32.mrb[5].mxu0  ;;  %v3002_v44 = vsel %vm2964_vm3, %v2935_v27, 0.0 }
 0x1e6   : > { %2966 = vst.msk [vmem:[%s5240_s23 + $0x8] sm:$0xff] %vm2964_vm3, %v2933_v58  ;;  %v2998_v51 = vsel %vm2964_vm3, %v2933_v58, 0.0  ;;  %v4141_v54 = vadd.f32 %v2750_v11, %v1274_v48  ;;  %v4092_v12 = vpop.f32.mrb[6].mxu0 }
 0x1e7   : > { %v2999_v17 = vadd.f32 %v2998_v51, %v2997_v2  ;;  %v2906_v18 = vadd.f32 %v4140_v61, %v5233_v9  ;;  %v4142_v21 = vadd.f32 %v4092_v12, %v3922_v49  ;;  %v2753_v8 = vpop.f32.mrb[7].mxu0 }
 0x1e8   : > { %v2904_v24 = vadd.f32 %v4141_v54, %v5233_v9  ;;  %v4143_v32 = vadd.f32 %v2753_v8, %v1277_v52 }
 0x1e9   : > { %v3001_v33 = vadd.f32 %v3000_v20, %v2999_v17  ;;  %v2938_v38 = vmax.f32 %v2906_v18, 0.0  ;;  %v2907_v39 = vadd.f32 %v4142_v21, %v5233_v9 }
 0x1ea   : > { %v2936_v45 = vmax.f32 %v2904_v24, 0.0  ;;  %v2905_v50 = vadd.f32 %v4143_v32, %v5233_v9 }
 0x1eb   : > { %2971 = vst.msk [vmem:[%s5240_s23 + $0x30] sm:$0xff] %vm2964_vm3, %v2938_v38  ;;  %v3003_v60 = vadd.f32 %v3002_v44, %v3001_v33  ;;  %v2939_v62 = vmax.f32 %v2907_v39, 0.0  ;;  %v3008_v1 = vsel %vm2964_vm3, %v2938_v38, 0.0 }
 0x1ec   : > { %2969 = vst.msk [vmem:[%s5240_s23 + $0x20] sm:$0xff] %vm2964_vm3, %v2936_v45  ;;  %v3004_v63 = vsel %vm2964_vm3, %v2936_v45, 0.0  ;;  %v2937_v0 = vmax.f32 %v2905_v50, 0.0  ;;  %v4095_v13 = vpop.f32.mrb[8].mxu0 }
 0x1ed   : > { %v3005_v14 = vadd.f32 %v3004_v63, %v3003_v60  ;;  %2972 = vst.msk [vmem:[%s5240_s23 + $0x38] sm:$0xff] %vm2964_vm3, %v2939_v62  ;;  %v4144_v15 = vadd.f32 %v4095_v13, %v5206_v4  ;;  %v2766_v16 = vpop.f32.mrb[9].mxu0 }
 0x1ee   : > { %2970 = vst.msk [vmem:[%s5240_s23 + $0x28] sm:$0xff] %vm2964_vm3, %v2937_v0  ;;  %v3006_v28 = vsel %vm2964_vm3, %v2937_v0, 0.0  ;;  %v4145_v29 = vadd.f32 %v2766_v16, %v5208_v5  ;;  %v4096_v31 = vpop.f32.mrb[10].mxu0  ;;  %v3010_v5 = vsel %vm2964_vm3, %v2939_v62, 0.0 }
 0x1ef   : > { %v3007_v46 = vadd.f32 %v3006_v28, %v3005_v14  ;;  %v2910_v48 = vadd.f32 %v4144_v15, %v5233_v9  ;;  %v4146_v49 = vadd.f32 %v4096_v31, %v5210_v6  ;;  %v2769_v52 = vpop.f32.mrb[11].mxu0 }
 0x1f0   : > { %v2908_v4 = vadd.f32 %v4145_v29, %v5233_v9  ;;  %v4147_v10 = vadd.f32 %v2769_v52, %v5212_v7 }
 0x1f1   : > { %v3009_v19 = vadd.f32 %v3008_v1, %v3007_v46  ;;  %v2942_v30 = vmax.f32 %v2910_v48, 0.0  ;;  %v2911_v34 = vadd.f32 %v4146_v49, %v5233_v9 }
 0x1f2   : > { %v2940_v35 = vmax.f32 %v2908_v4, 0.0  ;;  %v2909_v36 = vadd.f32 %v4147_v10, %v5233_v9 }
 0x1f3   : > { %2975 = vst.msk [vmem:[%s5240_s23 + $0x50] sm:$0xff] %vm2964_vm3, %v2942_v30  ;;  %v3011_v6 = vadd.f32 %v3010_v5, %v3009_v19  ;;  %v2943_v37 = vmax.f32 %v2911_v34, 0.0  ;;  %v5283_v3 = vpop.f32.mrb[20].mxu1  ;;  %v3016_v17 = vsel %vm2964_vm3, %v2942_v30, 0.0 }
 0x1f4   : > { %2973 = vst.msk [vmem:[%s5240_s23 + $0x40] sm:$0xff] %vm2964_vm3, %v2940_v35  ;;  %v3012_v7 = vsel %vm2964_vm3, %v2940_v35, 0.0  ;;  %v2941_v40 = vmax.f32 %v2909_v36, 0.0  ;;  %v4099_v41 = vpop.f32.mrb[12].mxu0  ;;  %v5288_v42 = vpop.f32.mrb[21].mxu1 }
 0x1f5   : > { %v3013_v56 = vadd.f32 %v3012_v7, %v3011_v6  ;;  %2976 = vst.msk [vmem:[%s5240_s23 + $0x58] sm:$0xff] %vm2964_vm3, %v2943_v37  ;;  %v4148_v57 = vadd.f32 %v4099_v41, %v5214_v22  ;;  %v2782_v27 = vpop.f32.mrb[13].mxu0  ;;  %v5293_v58 = vpop.f32.mrb[22].mxu1  ;;  %v3018_v24 = vsel %vm2964_vm3, %v2943_v37, 0.0 }
 0x1f6   : > { %2974 = vst.msk [vmem:[%s5240_s23 + $0x48] sm:$0xff] %vm2964_vm3, %v2941_v40  ;;  %v3014_v59 = vsel %vm2964_vm3, %v2941_v40, 0.0  ;;  %v4149_v61 = vadd.f32 %v2782_v27, %v5216_v23  ;;  %v4100_v11 = vpop.f32.mrb[14].mxu0  ;;  %v5299_v2 = vpop.f32.mrb[23].mxu1 }
 0x1f7   : > { %v3015_v51 = vadd.f32 %v3014_v59, %v3013_v56  ;;  %v2914_v54 = vadd.f32 %v4148_v57, %v5233_v9  ;;  %v4150_v12 = vadd.f32 %v4100_v11, %v5218_v25  ;;  %v2785_v22 = vpop.f32.mrb[15].mxu0 }
 0x1f8   : > { %v2912_v18 = vadd.f32 %v4149_v61, %v5233_v9  ;;  %v4151_v21 = vadd.f32 %v2785_v22, %v5220_v26 }
 0x1f9   : > { %v3017_v8 = vadd.f32 %v3016_v17, %v3015_v51  ;;  %v2946_v23 = vmax.f32 %v2914_v54, 0.0  ;;  %v2915_v20 = vadd.f32 %v4150_v12, %v5233_v9 }
 0x1fa   : > { %v2944_v32 = vmax.f32 %v2912_v18, 0.0  ;;  %v2913_v33 = vadd.f32 %v4151_v21, %v5233_v9 }
 0x1fb   : > { %2979 = vst.msk [vmem:[%s5240_s23 + $0x70] sm:$0xff] %vm2964_vm3, %v2946_v23  ;;  %v3019_v25 = vadd.f32 %v3018_v24, %v3017_v8  ;;  %v2947_v38 = vmax.f32 %v2915_v20, 0.0  ;;  %v5311_v39 = vpop.f32.mrb[24].mxu1  ;;  %v3024_v46 = vsel %vm2964_vm3, %v2946_v23, 0.0 }
 0x1fc   : > { %2977 = vst.msk [vmem:[%s5240_s23 + $0x60] sm:$0xff] %vm2964_vm3, %v2944_v32  ;;  %v3020_v26 = vsel %vm2964_vm3, %v2944_v32, 0.0  ;;  %v2945_v44 = vmax.f32 %v2913_v33, 0.0  ;;  %v4103_v45 = vpop.f32.mrb[16].mxu0  ;;  %v5316_v50 = vpop.f32.mrb[25].mxu1 }
 0x1fd   : > { %v3021_v60 = vadd.f32 %v3020_v26, %v3019_v25  ;;  %2980 = vst.msk [vmem:[%s5240_s23 + $0x78] sm:$0xff] %vm2964_vm3, %v2947_v38  ;;  %v4152_v62 = vadd.f32 %v4103_v45, %v5222_v43  ;;  %v2798_v63 = vpop.f32.mrb[17].mxu0  ;;  %v5321_v0 = vpop.f32.mrb[26].mxu1  ;;  %v3026_v4 = vsel %vm2964_vm3, %v2947_v38, 0.0 }
 0x1fe   : > { %2978 = vst.msk [vmem:[%s5240_s23 + $0x68] sm:$0xff] %vm2964_vm3, %v2945_v44  ;;  %v3022_v13 = vsel %vm2964_vm3, %v2945_v44, 0.0  ;;  %v4153_v14 = vadd.f32 %v2798_v63, %v5224_v47  ;;  %v4104_v15 = vpop.f32.mrb[18].mxu0  ;;  %v5327_v16 = vpop.f32.mrb[27].mxu1 }
 0x1ff   : > { %v3023_v28 = vadd.f32 %v3022_v13, %v3021_v60  ;;  %v2918_v29 = vadd.f32 %v4152_v62, %v5233_v9  ;;  %v4154_v31 = vadd.f32 %v4104_v15, %v5226_v53  ;;  %v2801_v43 = vpop.f32.mrb[19].mxu0 }
 0x200   : > { %v2916_v48 = vadd.f32 %v4153_v14, %v5233_v9  ;;  %v4155_v49 = vadd.f32 %v2801_v43, %v5228_v55 }
 0x201   : > { %v3025_v52 = vadd.f32 %v3024_v46, %v3023_v28  ;;  %v2950_v47 = vmax.f32 %v2918_v29, 0.0  ;;  %v2919_v1 = vadd.f32 %v4154_v31, %v5233_v9 }
 0x202   : > { %v2948_v10 = vmax.f32 %v2916_v48, 0.0  ;;  %v2917_v19 = vadd.f32 %v4155_v49, %v5233_v9 }
 0x203   : > { %2983 = vst.msk [vmem:[%s5240_s23 + $0x90] sm:$0xff] %vm2964_vm3, %v2950_v47  ;;  %v3027_v53 = vadd.f32 %v3026_v4, %v3025_v52  ;;  %v2951_v30 = vmax.f32 %v2919_v1, 0.0  ;;  %v5339_v34 = vpop.f32.mrb[28].mxu1  ;;  %v3032_v51 = vsel %vm2964_vm3, %v2950_v47, 0.0 }
 0x204   : > { %2981 = vst.msk [vmem:[%s5240_s23 + $0x80] sm:$0xff] %vm2964_vm3, %v2948_v10  ;;  %v3028_v55 = vsel %vm2964_vm3, %v2948_v10, 0.0  ;;  %v2949_v5 = vmax.f32 %v2917_v19, 0.0  ;;  %v4107_v35 = vpop.f32.mrb[20].mxu0  ;;  %v5344_v36 = vpop.f32.mrb[29].mxu1 }
 0x205   : > { %v3029_v6 = vadd.f32 %v3028_v55, %v3027_v53  ;;  %2984 = vst.msk [vmem:[%s5240_s23 + $0x98] sm:$0xff] %vm2964_vm3, %v2951_v30  ;;  %v4156_v37 = vadd.f32 %v4107_v35, %v5283_v3  ;;  %v2814_v7 = vpop.f32.mrb[21].mxu0  ;;  %v5349_v40 = vpop.f32.mrb[30].mxu1  ;;  %v3034_v18 = vsel %vm2964_vm3, %v2951_v30, 0.0 }
 0x206   : > { %2982 = vst.msk [vmem:[%s5240_s23 + $0x88] sm:$0xff] %vm2964_vm3, %v2949_v5  ;;  %v3030_v41 = vsel %vm2964_vm3, %v2949_v5, 0.0  ;;  %v4157_v56 = vadd.f32 %v2814_v7, %v5288_v42  ;;  %v4108_v57 = vpop.f32.mrb[22].mxu0  ;;  %v5355_v27 = vpop.f32.mrb[31].mxu1 }
 0x207   : > { %v3031_v59 = vadd.f32 %v3030_v41, %v3029_v6  ;;  %v2922_v61 = vadd.f32 %v4156_v37, %v5233_v9  ;;  %v4158_v11 = vadd.f32 %v4108_v57, %v5293_v58  ;;  %v2817_v3 = vpop.f32.mrb[23].mxu0 }
 0x208   : > { %v2920_v54 = vadd.f32 %v4157_v56, %v5233_v9  ;;  %v4159_v12 = vadd.f32 %v2817_v3, %v5299_v2 }
 0x209   : > { %v3033_v22 = vadd.f32 %v3032_v51, %v3031_v59  ;;  %v2954_v42 = vmax.f32 %v2922_v61, 0.0  ;;  %v2923_v17 = vadd.f32 %v4158_v11, %v5233_v9 }
 0x20a   : > { %v2952_v21 = vmax.f32 %v2920_v54, 0.0  ;;  %v2921_v8 = vadd.f32 %v4159_v12, %v5233_v9 }
 0x20b   : > { %2987 = vst.msk [vmem:[%s5240_s23 + $0xb0] sm:$0xff] %vm2964_vm3, %v2954_v42  ;;  %v3035_v58 = vadd.f32 %v3034_v18, %v3033_v22  ;;  %v2955_v23 = vmax.f32 %v2923_v17, 0.0  ;;  %v3040_v13 = vsel %vm2964_vm3, %v2954_v42, 0.0 }
 0x20c   : > { %2985 = vst.msk [vmem:[%s5240_s23 + $0xa0] sm:$0xff] %vm2964_vm3, %v2952_v21  ;;  %v3036_v20 = vsel %vm2964_vm3, %v2952_v21, 0.0  ;;  %v2953_v24 = vmax.f32 %v2921_v8, 0.0  ;;  %v4111_v2 = vpop.f32.mrb[24].mxu0 }
 0x20d   : > { %v3037_v32 = vadd.f32 %v3036_v20, %v3035_v58  ;;  %2988 = vst.msk [vmem:[%s5240_s23 + $0xb8] sm:$0xff] %vm2964_vm3, %v2955_v23  ;;  %v4160_v33 = vadd.f32 %v4111_v2, %v5311_v39  ;;  %v2830_v25 = vpop.f32.mrb[25].mxu0  ;;  %v3042_v29 = vsel %vm2964_vm3, %v2955_v23, 0.0 }
 0x20e   : > { %2986 = vst.msk [vmem:[%s5240_s23 + $0xa8] sm:$0xff] %vm2964_vm3, %v2953_v24  ;;  %v3038_v38 = vsel %vm2964_vm3, %v2953_v24, 0.0  ;;  %v4161_v26 = vadd.f32 %v2830_v25, %v5316_v50  ;;  %v4112_v44 = vpop.f32.mrb[26].mxu0 }
 0x20f   : > { %v3039_v45 = vadd.f32 %v3038_v38, %v3037_v32  ;;  %v2926_v60 = vadd.f32 %v4160_v33, %v5233_v9  ;;  %v4162_v62 = vadd.f32 %v4112_v44, %v5321_v0  ;;  %v2833_v63 = vpop.f32.mrb[27].mxu0 }
 0x210   : > { %v2924_v39 = vadd.f32 %v4161_v26, %v5233_v9  ;;  %v4163_v14 = vadd.f32 %v2833_v63, %v5327_v16 }
 0x211   : > { %v3041_v15 = vadd.f32 %v3040_v13, %v3039_v45  ;;  %v2958_v28 = vmax.f32 %v2926_v60, 0.0  ;;  %v2927_v50 = vadd.f32 %v4162_v62, %v5233_v9 }
 0x212   : > { %v2956_v31 = vmax.f32 %v2924_v39, 0.0  ;;  %v2925_v43 = vadd.f32 %v4163_v14, %v5233_v9 }
 0x213   : > { %2991 = vst.msk [vmem:[%s5240_s23 + $0xd0] sm:$0xff] %vm2964_vm3, %v2958_v28  ;;  %v3043_v0 = vadd.f32 %v3042_v29, %v3041_v15  ;;  %v2959_v46 = vmax.f32 %v2927_v50, 0.0  ;;  %v3048_v35 = vsel %vm2964_vm3, %v2958_v28, 0.0 }
 0x214   : > { %2989 = vst.msk [vmem:[%s5240_s23 + $0xc0] sm:$0xff] %vm2964_vm3, %v2956_v31  ;;  %v3044_v48 = vsel %vm2964_vm3, %v2956_v31, 0.0  ;;  %v2957_v49 = vmax.f32 %v2925_v43, 0.0  ;;  %v4115_v16 = vpop.f32.mrb[28].mxu0 }
 0x215   : > { %v3045_v52 = vadd.f32 %v3044_v48, %v3043_v0  ;;  %2992 = vst.msk [vmem:[%s5240_s23 + $0xd8] sm:$0xff] %vm2964_vm3, %v2959_v46  ;;  %v4164_v47 = vadd.f32 %v4115_v16, %v5339_v34  ;;  %v2846_v1 = vpop.f32.mrb[29].mxu0  ;;  %v3050_v41 = vsel %vm2964_vm3, %v2959_v46, 0.0 }
 0x216   : > { %2990 = vst.msk [vmem:[%s5240_s23 + $0xc8] sm:$0xff] %vm2964_vm3, %v2957_v49  ;;  %v3046_v4 = vsel %vm2964_vm3, %v2957_v49, 0.0  ;;  %v4165_v10 = vadd.f32 %v2846_v1, %v5344_v36  ;;  %v4116_v19 = vpop.f32.mrb[30].mxu0 }
 0x217   : > { %v3047_v53 = vadd.f32 %v3046_v4, %v3045_v52  ;;  %v2930_v30 = vadd.f32 %v4164_v47, %v5233_v9  ;;  %v4166_v55 = vadd.f32 %v4116_v19, %v5349_v40  ;;  %v2849_v5 = vpop.f32.mrb[31].mxu0 }
 0x218   : > { %v2928_v34 = vadd.f32 %v4165_v10, %v5233_v9  ;;  %v4167_v6 = vadd.f32 %v2849_v5, %v5355_v27 }
 0x219   : > { %v3049_v37 = vadd.f32 %v3048_v35, %v3047_v53  ;;  %v2962_v7 = vmax.f32 %v2930_v30, 0.0  ;;  %v2931_v36 = vadd.f32 %v4166_v55, %v5233_v9 }
 0x21a   : > { %v2960_v56 = vmax.f32 %v2928_v34, 0.0  ;;  %v2929_v57 = vadd.f32 %v4167_v6, %v5233_v9 }
 0x21b   : > { %2995 = vst.msk [vmem:[%s5240_s23 + $0xf0] sm:$0xff] %vm2964_vm3, %v2962_v7  ;;  %v3051_v40 = vadd.f32 %v3050_v41, %v3049_v37  ;;  %v2963_v59 = vmax.f32 %v2931_v36, 0.0  ;;  %v3056_v9 = vsel %vm2964_vm3, %v2962_v7, 0.0 }
 0x21c   : > { %2993 = vst.msk [vmem:[%s5240_s23 + $0xe0] sm:$0xff] %vm2964_vm3, %v2960_v56  ;;  %v3052_v61 = vsel %vm2964_vm3, %v2960_v56, 0.0  ;;  %v2961_v11 = vmax.f32 %v2929_v57, 0.0 }
 0x21d   : > { %v3053_v27 = vadd.f32 %v3052_v61, %v3051_v40  ;;  %2996 = vst.msk [vmem:[%s5240_s23 + $0xf8] sm:$0xff] %vm2964_vm3, %v2963_v59  ;;  %v3058_v12 = vsel %vm2964_vm3, %v2963_v59, 0.0 }
 0x21e   : > { %2994 = vst.msk [vmem:[%s5240_s23 + $0xe8] sm:$0xff] %vm2964_vm3, %v2961_v11  ;;  %v3054_v3 = vsel %vm2964_vm3, %v2961_v11, 0.0 }
 0x21f   : > { %v3055_v51 = vadd.f32 %v3054_v3, %v3053_v27 }
 0x221   : > { %v3057_v54 = vadd.f32 %v3056_v9, %v3055_v51 }
 0x223   : > { %v3059_v22 = vadd.f32 %v3058_v12, %v3057_v54 }
 0x225   : > { %v3060_v42 = vrot.slane %v3059_v22, 4 }
 0x227   : > { %v3061_v17 = vadd.f32 %v3060_v42, %v3059_v22 }
 0x229   : > { %v3062_v18 = vrot.slane %v3061_v17, 2 }
 0x22b   : > { %v3063_v21 = vadd.f32 %v3062_v18, %v3061_v17 }
 0x22d   : > { %v3064_v8 = vrot.slane %v3063_v21, 1 }
 0x22f   : > { %v3065_v58 = vadd.f32 %v3064_v8, %v3063_v21 }
 0x231   : > { %v3066_v23 = vmul.f32 0.00390625, %v3065_v58 }
 0x233   : > { %4126 = vmatmul.mubr.msk.f32.vlgmr.msra.gmra.mrb[32].mxu1 %vm2964_vm3, %v3066_v23  ;;  %3068 = vst.msk [vmem:[%s281_s29] sm:$0x1] %vm3067_vm4, %v3066_v23 }
 0x234   : > { %4463 = shalt.err (!%p4460_p3)
}
 0x235   : > { %s4464_s22 = scalar_lea.hbm %s5428_s15, 16  ;;  %s4468_s13 = scalar_lea.hbm %s5506_s6, 32 }
 0x236   : > { %p4465_p4 = scmp.ne.s32.totalorder %s5428_s15, %s4464_s22  ;;  %p4469_p9 = scmp.lt.u32.totalorder %s5428_s15, %s5506_s6 }
 0x237   : > { %p4470_p10 = scmp.lt.u32.totalorder %s4468_s13, %s4464_s22  ;;  %p4472_p12 = scmp.lt.u32.totalorder %s4464_s22, %s5428_s15 }
 0x238   : > { %p4466_p7 = pnand %p4465_p4, %p4629_p5 }
 0x239   : > { %p4471_p11 = por %p4470_p10, %p4469_p9 }
 0x23a   : > { %p4467_p8 = pneg %p4466_p7 }
 0x23b   : > { %p4473_p13 = por %p4472_p12, %p4471_p11 }
 0x23d   : > { %p4474_p0 = pnand %p4473_p13, %p4467_p8 }
 0x23f   : > { %4477 = shalt.err (!%p4474_p0)
}
 0x240   : > { %4403 = dma.vmem_to_hbm [thread:$0]  (%p4629_p5), %s3175_s8, 16, %s5428_s15, %s3155_s16   ;;  %v3073_v20 = vld [vmem:[%s5504_s4] sm:$0x1]  ;;  %vm3147_vm5 = vcmask 73728  }
 0x241   : > { %s287_s20 = scalar_lea.vmem [#allocation4], %s5418_s21  ;;  %s5457_s13 = scalar_lea.hbm %s5507_s7, %s3648_s9 }
 0x242   : > { %s3187_s23 = sshll.u32 %s287_s20, 4  ;;  %s3159_s15 = scalar_lea.sflag [#allocation5], %s5418_s21  ;;  %s5459_s23 = int_to_ptr.vmem [resolvable:$true] %s3187_s23 }
 0x243   : > { %s4478_s8 = scalar_lea.vmem %s5459_s23, 16  ;;  %s4550_s16 = smov [#allocation4]  }
 0x244   : > { %p4479_p1 = scmp.ne.s32.totalorder %s5459_s23, %s4478_s8  ;;  %s4482_s14 = sshll.u32 %s4550_s16, 4  ;;  %s4483_s14 = int_to_ptr.vmem [resolvable:$false] %s4482_s14 }
 0x245   : > { %s4484_s28 = scalar_lea.vmem %s4483_s14, 32  ;;  %p4485_p4 = scmp.lt.s32.totalorder %s5459_s23, %s4483_s14 }
 0x246   : > { %p4480_p2 = pnand %p4479_p1, %p4629_p5  ;;  %p4486_p7 = scmp.lt.s32.totalorder %s4484_s28, %s4478_s8 }
 0x248   : > { %p4481_p3 = pneg %p4480_p2  ;;  %p4487_p8 = por %p4486_p7, %p4485_p4 }
 0x24a   : > { %p4488_p9 = pnand %p4487_p8, %p4481_p3 }
 0x306   : > { %v3143_v24 = vpop.f32.mrb[32].mxu1 }
 0x307   : > { %v3144_v2 = vadd.f32 %v3143_v24, %v3073_v20  ;;  %v4127_v32 = vpop.f32.mrb[33].mxu1 }
 0x309   : > { %3148 = vst.msk [vmem:[%s287_s20] sm:$0x1] %vm3147_vm5, %v3144_v2 }
 0x30a   : > { %4491 = shalt.err (!%p4488_p9)
}
 0x30b   : > { %s4492_s21 = scalar_lea.hbm %s5457_s13, 16  ;;  %s4496_s17 = scalar_lea.hbm %s5507_s7, 32 }
 0x30c   : > { %p4493_p10 = scmp.ne.s32.totalorder %s5457_s13, %s4492_s21  ;;  %p4497_p13 = scmp.lt.u32.totalorder %s5457_s13, %s5507_s7 }
 0x30d   : > { %p4498_p0 = scmp.lt.u32.totalorder %s4496_s17, %s4492_s21  ;;  %p4500_p2 = scmp.lt.u32.totalorder %s4492_s21, %s5457_s13 }
 0x30e   : > { %p4494_p11 = pnand %p4493_p10, %p4629_p5 }
 0x30f   : > { %p4499_p1 = por %p4498_p0, %p4497_p13 }
 0x310   : > { %p4495_p12 = pneg %p4494_p11 }
 0x311   : > { %p4501_p3 = por %p4500_p2, %p4499_p1 }
 0x313   : > { %p4502_p4 = pnand %p4501_p3, %p4495_p12 }
 0x315   : > { %4505 = shalt.err (!%p4502_p4)
}
 0x316   : > { %4404 = dma.vmem_to_hbm [thread:$0]  (%p4629_p5), %s5459_s23, 16, %s5457_s13, %s3159_s15  }
 0x317 PF: > { %p4414_p7 = scmp.ge.s32.totalorder %s4544_s27, 2  ;;  %s3207_s22 = sand.u32 1, %s4532_s24  }
 0x318   : > { %s3208_s29 = scalar_lea.sflag [#allocation3], %s3207_s22 }
 0x319   : > { %p4408_p8 = pnand %p4414_p7, %p4633_p6 }
 0x31b   : > { %4523 = dma.done.wait (!%p4408_p8), %s3208_s29, 16  }
 0x31c   : > { %4525 = vsyncadd (!%p4408_p8), %s3208_s29, 4294967280  ;;  %s3216_s8 = scalar_lea.sflag [#allocation5], %s3207_s22 }
 0x31d   : > { %4527 = dma.done.wait (!%p4408_p8), %s3216_s8, 16  }
 0x31e   : > { %4529 = vsyncadd (!%p4408_p8), %s3216_s8, 4294967280  ;;  %p21_p5 = scmp.ge.s32.totalorder %s4616_s30, 4   ;;  %s5510_s24 = smov %s4536_s25 }
 0x31f   : > { %s5511_s25 = smov %s4540_s26  ;;  %s5512_s26 = smov %s4627_s10 }
 0x320   : > { %s5513_s27 = smov %s4616_s30  ;;  %23 = sbr.rel (!%p21_p5) target bundleno = 5 (0x5), region = 114 }
 0x327   :  { %3220 = vsyncpa [#allocation3], 1 }
 0x328   :  { %3222 = vsyncpa [#allocation3 + $0x1], 1 }
 0x329   :  { %3223 = vsyncpa [#allocation5], 1 }
 0x32a   :  { %3225 = vsyncpa [#allocation5 + $0x1], 1 }

</bundles_post_ra>
